<compile_context>
chip_gen: v6e
topology: v6e:2x2x1
jax: 0.10.0
libtpu: 0.0.40
codegen_flags: <defaults>
</compile_context>

<pallas_src>
import jax
import jax.numpy as jnp
from jax.experimental import pallas as pl
from jax.experimental.pallas import tpu as pltpu

# ----------------------------- model dims (small) -----------------------------
VOCAB_SIZE = 64
OUTPUT_SIZE = VOCAB_SIZE
EMBEDDING_DIM = 32
HIDDEN_DIM = 32
N_LAYERS = 2
BATCH = 8          # full 8-sublane vregs
SEQ_LEN = 8


# ------------------------------- fused kernel ---------------------------------
def fused_rnn_kernel(idx_ref, embed_ref,
                     wih0_ref, whh0_ref, b0_ref,
                     wih1_ref, whh1_ref, b1_ref,
                     wfc_ref, bfc_ref,
                     h0_ref, c0_ref,
                     logits_ref, hN_ref, cN_ref,
                     gx_scr, hseq_scr):
    """Entire forward pass in one kernel invocation (no grid).

    idx_ref   : (T*B, 1) int32  time-major flattened token ids
    embed_ref : (V, E)
    wih*      : (E or H, 4H), whh*: (H, 4H), b*: (1, 4H)   gate cols [i,f,o,g]
    wfc       : (H, O), bfc: (1, O)
    h0/c0     : (L, B, H) initial states
    logits    : (B, O);  hN/cN: (L, B, H)
    gx_scr    : (T, B, 4H) VMEM — hoisted x-projection (reused by both layers)
    hseq_scr  : (T, B, H)  VMEM — layer-0 output sequence (never leaves VMEM)
    """
    T, B, G = gx_scr.shape
    H = G // 4
    V = embed_ref.shape[0]

    # ---- embedding lookup as one-hot @ table (single MXU matmul, no XLA gather)
    idx = idx_ref[...]                                             # (T*B, 1) i32
    vocab_iota = jax.lax.broadcasted_iota(jnp.int32, (T * B, V), 1)
    onehot = (idx == vocab_iota).astype(jnp.float32)               # (T*B, V)
    x = jnp.dot(onehot, embed_ref[...],
                preferred_element_type=jnp.float32)                # (T*B, E)

    def cell(gates, h, c):
        # gate columns [i, f, o, g]: one sigmoid over 3H, one tanh over H
        sig = jax.nn.sigmoid(gates[:, :3 * H])
        g_g = jnp.tanh(gates[:, 3 * H:])
        i_g = sig[:, 0 * H:1 * H]
        f_g = sig[:, 1 * H:2 * H]
        o_g = sig[:, 2 * H:3 * H]
        c_new = f_g * c + i_g * g_g
        h_new = o_g * jnp.tanh(c_new)
        return h_new, c_new

    def run_layer(x_flat, wih_ref, whh_ref, b_ref, layer, store_seq):
        # Hoist the input projection out of the recurrence: one batched matmul
        # over all T steps, kept resident in VMEM scratch.
        gx_scr[...] = (jnp.dot(x_flat, wih_ref[...],
                               preferred_element_type=jnp.float32)
                       + b_ref[...]).reshape(T, B, G)
        h = h0_ref[layer]
        c = c0_ref[layer]
        whh = whh_ref[...]
        # T is static -> serial recurrence fully unrolled
        # (equivalent to lax.fori_loop(0, T, ..., unroll=True)).
        for t in range(T):
            gates = gx_scr[t] + jnp.dot(h, whh,
                                        preferred_element_type=jnp.float32)
            h, c = cell(gates, h, c)
            if store_seq:
                hseq_scr[t] = h
        hN_ref[layer] = h
        cN_ref[layer] = c
        return h

    run_layer(x, wih0_ref, whh0_ref, b0_ref, 0, store_seq=True)
    # TODO(synk): inter-layer dropout (p=0.5) is train-only in PyTorch; eval semantics.
    x1 = hseq_scr[...].reshape(T * B, H)
    h_last = run_layer(x1, wih1_ref, whh1_ref, b1_ref, 1, store_seq=False)

    # final FC on the last-timestep hidden of the top layer (== lstm_out[:, -1])
    logits_ref[...] = (jnp.dot(h_last, wfc_ref[...],
                               preferred_element_type=jnp.float32)
                       + bfc_ref[...]).astype(logits_ref.dtype)


# --------------------------------- wrapper -------------------------------------
def rnn_pallas(params, nn_input, hidden):
    h0, c0 = hidden                              # (n_layers, B, H) each
    B, T = nn_input.shape
    # tiny reorder of 8*8 int32 token ids to time-major flat layout
    idx_tm = jnp.transpose(nn_input).reshape(T * B, 1).astype(jnp.int32)
    logits, h_n, c_n = pl.pallas_call(
        fused_rnn_kernel,
        out_shape=(
            jax.ShapeDtypeStruct((B, OUTPUT_SIZE), jnp.float32),
            jax.ShapeDtypeStruct((N_LAYERS, B, HIDDEN_DIM), jnp.float32),
            jax.ShapeDtypeStruct((N_LAYERS, B, HIDDEN_DIM), jnp.float32),
        ),
        scratch_shapes=[
            pltpu.VMEM((T, B, 4 * HIDDEN_DIM), jnp.float32),
            pltpu.VMEM((T, B, HIDDEN_DIM), jnp.float32),
        ],
    )(idx_tm, params["embed"],
      params["w_ih_0"], params["w_hh_0"], params["b_0"],
      params["w_ih_1"], params["w_hh_1"], params["b_1"],
      params["w_fc"], params["b_fc"],
      h0, c0)
    return logits, (h_n, c_n)


@jax.jit
def rnn_forward(params, nn_input, hidden):
    """Equivalent of RNN.forward: returns (out[B, output_size], (h_n, c_n))."""
    return rnn_pallas(params, nn_input, hidden)


# --------------------------------- params --------------------------------------
def init_params(key):
    ks = jax.random.split(key, 3 + 3 * N_LAYERS)
    params = {}
    # embedding ~ N(0, 1), like nn.Embedding default
    params["embed"] = jax.random.normal(ks[0], (VOCAB_SIZE, EMBEDDING_DIM),
                                        jnp.float32)
    bound = 1.0 / jnp.sqrt(HIDDEN_DIM)
    for l in range(N_LAYERS):
        in_dim = EMBEDDING_DIM if l == 0 else HIDDEN_DIM
        k0, k1, k2 = ks[1 + 3 * l], ks[2 + 3 * l], ks[3 + 3 * l]
        # gate column order [i, f, o, g] (permuted PyTorch layout; semantics identical)
        params[f"w_ih_{l}"] = jax.random.uniform(
            k0, (in_dim, 4 * HIDDEN_DIM), jnp.float32, -bound, bound)
        params[f"w_hh_{l}"] = jax.random.uniform(
            k1, (HIDDEN_DIM, 4 * HIDDEN_DIM), jnp.float32, -bound, bound)
        # b = b_ih + b_hh, kept as (1, 4H) for a clean 2-D VMEM layout
        params[f"b_{l}"] = jax.random.uniform(
            k2, (1, 4 * HIDDEN_DIM), jnp.float32, -bound, bound)
    fbound = 1.0 / jnp.sqrt(HIDDEN_DIM)
    params["w_fc"] = jax.random.uniform(
        ks[-2], (HIDDEN_DIM, OUTPUT_SIZE), jnp.float32, -fbound, fbound)
    params["b_fc"] = jax.random.uniform(
        ks[-1], (1, OUTPUT_SIZE), jnp.float32, -fbound, fbound)
    return params


# ----------------------------- pure-JAX reference ------------------------------
def _ref_forward(params, nn_input, hidden):
    h0, c0 = hidden
    emb = params["embed"][nn_input]              # (B, T, E)
    x = jnp.transpose(emb, (1, 0, 2))            # (T, B, E)
    H = HIDDEN_DIM
    h_fs, c_fs = [], []
    for l in range(N_LAYERS):
        w_ih, w_hh, b = params[f"w_ih_{l}"], params[f"w_hh_{l}"], params[f"b_{l}"]

        def step(carry, x_t):
            h, c = carry
            g = x_t @ w_ih + h @ w_hh + b        # gate cols [i, f, o, g]
            i = jax.nn.sigmoid(g[:, 0 * H:1 * H])
            f = jax.nn.sigmoid(g[:, 1 * H:2 * H])
            o = jax.nn.sigmoid(g[:, 2 * H:3 * H])
            gg = jnp.tanh(g[:, 3 * H:4 * H])
            c = f * c + i * gg
            h = o * jnp.tanh(c)
            return (h, c), h

        (hT, cT), outs = jax.lax.scan(step, (h0[l], c0[l]), x)
        h_fs.append(hT)
        c_fs.append(cT)
        x = outs
    out = x[-1] @ params["w_fc"] + params["b_fc"]
    return out, (jnp.stack(h_fs), jnp.stack(c_fs))


if __name__ == "__main__":
    key = jax.random.PRNGKey(0)
    pkey, dkey, hkey, ckey = jax.random.split(key, 4)
    params = init_params(pkey)

    nn_input = jax.random.randint(dkey, (BATCH, SEQ_LEN), 0, VOCAB_SIZE,
                                  dtype=jnp.int32)
    hidden = (0.1 * jax.random.normal(hkey, (N_LAYERS, BATCH, HIDDEN_DIM),
                                      jnp.float32),
              0.1 * jax.random.normal(ckey, (N_LAYERS, BATCH, HIDDEN_DIM),
                                      jnp.float32))

    out, (h_n, c_n) = rnn_forward(params, nn_input, hidden)
    jax.block_until_ready((out, h_n, c_n))

    ref_out, (ref_h, ref_c) = _ref_forward(params, nn_input, hidden)
    assert out.shape == (BATCH, OUTPUT_SIZE)
    assert h_n.shape == (N_LAYERS, BATCH, HIDDEN_DIM)
    assert c_n.shape == (N_LAYERS, BATCH, HIDDEN_DIM)
    assert jnp.allclose(out, ref_out, atol=1e-4, rtol=1e-4)
    assert jnp.allclose(h_n, ref_h, atol=1e-4, rtol=1e-4)
    assert jnp.allclose(c_n, ref_c, atol=1e-4, rtol=1e-4)

    print("KERNEL_OK")
</pallas_src>

<mosaic_0001>
module attributes {stable_mosaic.version = 11 : i64} {
  func.func @fused_rnn_kernel(%arg0: memref<64x1xi32, #tpu.memory_space<vmem>>, %arg1: memref<64x32xf32, #tpu.memory_space<vmem>>, %arg2: memref<32x128xf32, #tpu.memory_space<vmem>>, %arg3: memref<32x128xf32, #tpu.memory_space<vmem>>, %arg4: memref<1x128xf32, #tpu.memory_space<vmem>>, %arg5: memref<32x128xf32, #tpu.memory_space<vmem>>, %arg6: memref<32x128xf32, #tpu.memory_space<vmem>>, %arg7: memref<1x128xf32, #tpu.memory_space<vmem>>, %arg8: memref<32x64xf32, #tpu.memory_space<vmem>>, %arg9: memref<1x64xf32, #tpu.memory_space<vmem>>, %arg10: memref<2x8x32xf32, #tpu.memory_space<vmem>>, %arg11: memref<2x8x32xf32, #tpu.memory_space<vmem>>, %arg12: memref<8x64xf32, #tpu.memory_space<vmem>>, %arg13: memref<2x8x32xf32, #tpu.memory_space<vmem>>, %arg14: memref<2x8x32xf32, #tpu.memory_space<vmem>>, %arg15: memref<8x8x128xf32, #tpu.memory_space<vmem>>, %arg16: memref<8x8x32xf32, #tpu.memory_space<vmem>>) attributes {dimension_semantics = [], scalar_prefetch = 0 : i64, scratch_operands = 2 : i64, tpu.core_type = #tpu.core_type<tc>} {
    %c0 = arith.constant 0 : index
    %c0_0 = arith.constant 0 : index
    %0 = vector.load %arg0[%c0, %c0_0] : memref<64x1xi32, #tpu.memory_space<vmem>>, vector<64x1xi32>
    %1 = tpu.iota {dimensions = array<i32: 1>} : vector<64x64xi32>
    %2 = vector.broadcast %0 : vector<64x1xi32> to vector<64x64xi32>
    %3 = arith.cmpi eq, %2, %1 : vector<64x64xi32>
    %4 = arith.extui %3 : vector<64x64xi1> to vector<64x64xi32>
    %5 = arith.sitofp %4 : vector<64x64xi32> to vector<64x64xf32>
    %c0_1 = arith.constant 0 : index
    %c0_2 = arith.constant 0 : index
    %6 = vector.load %arg1[%c0_1, %c0_2] : memref<64x32xf32, #tpu.memory_space<vmem>>, vector<64x32xf32>
    %cst = arith.constant dense<0.000000e+00> : vector<64x32xf32>
    %7 = tpu.matmul %5, %6, %cst {dimension_numbers = #tpu.dot_dimension_numbers<[1], [0], [0], [1], [0, 0, 1, 1], [], []>} : vector<64x64xf32>, vector<64x32xf32>, vector<64x32xf32> -> vector<64x32xf32>
    %c0_3 = arith.constant 0 : index
    %c0_4 = arith.constant 0 : index
    %8 = vector.load %arg2[%c0_3, %c0_4] : memref<32x128xf32, #tpu.memory_space<vmem>>, vector<32x128xf32>
    %cst_5 = arith.constant dense<0.000000e+00> : vector<64x128xf32>
    %9 = tpu.matmul %7, %8, %cst_5 {dimension_numbers = #tpu.dot_dimension_numbers<[1], [0], [0], [1], [0, 0, 1, 1], [], []>} : vector<64x32xf32>, vector<32x128xf32>, vector<64x128xf32> -> vector<64x128xf32>
    %c0_6 = arith.constant 0 : index
    %c0_7 = arith.constant 0 : index
    %10 = vector.load %arg4[%c0_6, %c0_7] : memref<1x128xf32, #tpu.memory_space<vmem>>, vector<1x128xf32>
    %11 = vector.broadcast %10 : vector<1x128xf32> to vector<64x128xf32>
    %12 = arith.addf %9, %11 : vector<64x128xf32>
    %13 = vector.shape_cast %12 : vector<64x128xf32> to vector<8x8x128xf32>
    %c0_8 = arith.constant 0 : index
    %c0_9 = arith.constant 0 : index
    %c0_10 = arith.constant 0 : index
    %14 = vector.load %arg15[%c0_8, %c0_9, %c0_10] : memref<8x8x128xf32, #tpu.memory_space<vmem>>, vector<8x8x128xf32>
    tpu.vector_store %arg15[%c0_8, %c0_9, %c0_10], %13 {strides = array<i32>} : memref<8x8x128xf32, #tpu.memory_space<vmem>>, vector<8x8x128xf32>,
    %c0_11 = arith.constant 0 : index
    %c0_12 = arith.constant 0 : index
    %c0_13 = arith.constant 0 : index
    %15 = vector.load %arg10[%c0_11, %c0_12, %c0_13] : memref<2x8x32xf32, #tpu.memory_space<vmem>>, vector<1x8x32xf32>
    %16 = vector.shape_cast %15 : vector<1x8x32xf32> to vector<8x32xf32>
    %c0_14 = arith.constant 0 : index
    %c0_15 = arith.constant 0 : index
    %c0_16 = arith.constant 0 : index
    %17 = vector.load %arg11[%c0_14, %c0_15, %c0_16] : memref<2x8x32xf32, #tpu.memory_space<vmem>>, vector<1x8x32xf32>
    %18 = vector.shape_cast %17 : vector<1x8x32xf32> to vector<8x32xf32>
    %c0_17 = arith.constant 0 : index
    %c0_18 = arith.constant 0 : index
    %19 = vector.load %arg3[%c0_17, %c0_18] : memref<32x128xf32, #tpu.memory_space<vmem>>, vector<32x128xf32>
    %c0_19 = arith.constant 0 : index
    %c0_20 = arith.constant 0 : index
    %c0_21 = arith.constant 0 : index
    %20 = vector.load %arg15[%c0_19, %c0_20, %c0_21] : memref<8x8x128xf32, #tpu.memory_space<vmem>>, vector<1x8x128xf32>
    %21 = vector.shape_cast %20 : vector<1x8x128xf32> to vector<8x128xf32>
    %cst_22 = arith.constant dense<0.000000e+00> : vector<8x128xf32>
    %22 = tpu.matmul %16, %19, %cst_22 {dimension_numbers = #tpu.dot_dimension_numbers<[1], [0], [0], [1], [0, 0, 1, 1], [], []>} : vector<8x32xf32>, vector<32x128xf32>, vector<8x128xf32> -> vector<8x128xf32>
    %23 = arith.addf %21, %22 : vector<8x128xf32>
    %24 = vector.extract_strided_slice %23 {offsets = [0, 0], sizes = [8, 96], strides = [1, 1]} : vector<8x128xf32> to vector<8x96xf32>
    %25 = arith.negf %24 : vector<8x96xf32>
    %26 = math.exp %25 : vector<8x96xf32>
    %cst_23 = arith.constant 1.000000e+00 : f32
    %27 = vector.broadcast %cst_23 : f32 to vector<8x96xf32>
    %28 = arith.addf %27, %26 : vector<8x96xf32>
    %29 = arith.divf %27, %28 : vector<8x96xf32>
    %30 = vector.extract_strided_slice %23 {offsets = [0, 96], sizes = [8, 32], strides = [1, 1]} : vector<8x128xf32> to vector<8x32xf32>
    %31 = math.tanh %30 : vector<8x32xf32>
    %32 = vector.extract_strided_slice %29 {offsets = [0, 0], sizes = [8, 32], strides = [1, 1]} : vector<8x96xf32> to vector<8x32xf32>
    %33 = vector.extract_strided_slice %29 {offsets = [0, 32], sizes = [8, 32], strides = [1, 1]} : vector<8x96xf32> to vector<8x32xf32>
    %34 = vector.extract_strided_slice %29 {offsets = [0, 64], sizes = [8, 32], strides = [1, 1]} : vector<8x96xf32> to vector<8x32xf32>
    %35 = arith.mulf %33, %18 : vector<8x32xf32>
    %36 = arith.mulf %32, %31 : vector<8x32xf32>
    %37 = arith.addf %35, %36 : vector<8x32xf32>
    %38 = math.tanh %37 : vector<8x32xf32>
    %39 = arith.mulf %34, %38 : vector<8x32xf32>
    %c0_24 = arith.constant 0 : index
    %c0_25 = arith.constant 0 : index
    %c0_26 = arith.constant 0 : index
    %40 = vector.load %arg16[%c0_24, %c0_25, %c0_26] : memref<8x8x32xf32, #tpu.memory_space<vmem>>, vector<1x8x32xf32>
    %41 = vector.shape_cast %40 : vector<1x8x32xf32> to vector<8x32xf32>
    %42 = vector.shape_cast %39 : vector<8x32xf32> to vector<1x8x32xf32>
    tpu.vector_store %arg16[%c0_24, %c0_25, %c0_26], %42 {strides = array<i32>} : memref<8x8x32xf32, #tpu.memory_space<vmem>>, vector<1x8x32xf32>,
    %c1 = arith.constant 1 : index
    %c0_27 = arith.constant 0 : index
    %c0_28 = arith.constant 0 : index
    %43 = vector.load %arg15[%c1, %c0_27, %c0_28] : memref<8x8x128xf32, #tpu.memory_space<vmem>>, vector<1x8x128xf32>
    %44 = vector.shape_cast %43 : vector<1x8x128xf32> to vector<8x128xf32>
    %cst_29 = arith.constant dense<0.000000e+00> : vector<8x128xf32>
    %45 = tpu.matmul %39, %19, %cst_29 {dimension_numbers = #tpu.dot_dimension_numbers<[1], [0], [0], [1], [0, 0, 1, 1], [], []>} : vector<8x32xf32>, vector<32x128xf32>, vector<8x128xf32> -> vector<8x128xf32>
    %46 = arith.addf %44, %45 : vector<8x128xf32>
    %47 = vector.extract_strided_slice %46 {offsets = [0, 0], sizes = [8, 96], strides = [1, 1]} : vector<8x128xf32> to vector<8x96xf32>
    %48 = arith.negf %47 : vector<8x96xf32>
    %49 = math.exp %48 : vector<8x96xf32>
    %cst_30 = arith.constant 1.000000e+00 : f32
    %50 = vector.broadcast %cst_30 : f32 to vector<8x96xf32>
    %51 = arith.addf %50, %49 : vector<8x96xf32>
    %52 = arith.divf %50, %51 : vector<8x96xf32>
    %53 = vector.extract_strided_slice %46 {offsets = [0, 96], sizes = [8, 32], strides = [1, 1]} : vector<8x128xf32> to vector<8x32xf32>
    %54 = math.tanh %53 : vector<8x32xf32>
    %55 = vector.extract_strided_slice %52 {offsets = [0, 0], sizes = [8, 32], strides = [1, 1]} : vector<8x96xf32> to vector<8x32xf32>
    %56 = vector.extract_strided_slice %52 {offsets = [0, 32], sizes = [8, 32], strides = [1, 1]} : vector<8x96xf32> to vector<8x32xf32>
    %57 = vector.extract_strided_slice %52 {offsets = [0, 64], sizes = [8, 32], strides = [1, 1]} : vector<8x96xf32> to vector<8x32xf32>
    %58 = arith.mulf %56, %37 : vector<8x32xf32>
    %59 = arith.mulf %55, %54 : vector<8x32xf32>
    %60 = arith.addf %58, %59 : vector<8x32xf32>
    %61 = math.tanh %60 : vector<8x32xf32>
    %62 = arith.mulf %57, %61 : vector<8x32xf32>
    %c1_31 = arith.constant 1 : index
    %c0_32 = arith.constant 0 : index
    %c0_33 = arith.constant 0 : index
    %63 = vector.load %arg16[%c1_31, %c0_32, %c0_33] : memref<8x8x32xf32, #tpu.memory_space<vmem>>, vector<1x8x32xf32>
    %64 = vector.shape_cast %63 : vector<1x8x32xf32> to vector<8x32xf32>
    %65 = vector.shape_cast %62 : vector<8x32xf32> to vector<1x8x32xf32>
    tpu.vector_store %arg16[%c1_31, %c0_32, %c0_33], %65 {strides = array<i32>} : memref<8x8x32xf32, #tpu.memory_space<vmem>>, vector<1x8x32xf32>,
    %c2 = arith.constant 2 : index
    %c0_34 = arith.constant 0 : index
    %c0_35 = arith.constant 0 : index
    %66 = vector.load %arg15[%c2, %c0_34, %c0_35] : memref<8x8x128xf32, #tpu.memory_space<vmem>>, vector<1x8x128xf32>
    %67 = vector.shape_cast %66 : vector<1x8x128xf32> to vector<8x128xf32>
    %cst_36 = arith.constant dense<0.000000e+00> : vector<8x128xf32>
    %68 = tpu.matmul %62, %19, %cst_36 {dimension_numbers = #tpu.dot_dimension_numbers<[1], [0], [0], [1], [0, 0, 1, 1], [], []>} : vector<8x32xf32>, vector<32x128xf32>, vector<8x128xf32> -> vector<8x128xf32>
    %69 = arith.addf %67, %68 : vector<8x128xf32>
    %70 = vector.extract_strided_slice %69 {offsets = [0, 0], sizes = [8, 96], strides = [1, 1]} : vector<8x128xf32> to vector<8x96xf32>
    %71 = arith.negf %70 : vector<8x96xf32>
    %72 = math.exp %71 : vector<8x96xf32>
    %cst_37 = arith.constant 1.000000e+00 : f32
    %73 = vector.broadcast %cst_37 : f32 to vector<8x96xf32>
    %74 = arith.addf %73, %72 : vector<8x96xf32>
    %75 = arith.divf %73, %74 : vector<8x96xf32>
    %76 = vector.extract_strided_slice %69 {offsets = [0, 96], sizes = [8, 32], strides = [1, 1]} : vector<8x128xf32> to vector<8x32xf32>
    %77 = math.tanh %76 : vector<8x32xf32>
    %78 = vector.extract_strided_slice %75 {offsets = [0, 0], sizes = [8, 32], strides = [1, 1]} : vector<8x96xf32> to vector<8x32xf32>
    %79 = vector.extract_strided_slice %75 {offsets = [0, 32], sizes = [8, 32], strides = [1, 1]} : vector<8x96xf32> to vector<8x32xf32>
    %80 = vector.extract_strided_slice %75 {offsets = [0, 64], sizes = [8, 32], strides = [1, 1]} : vector<8x96xf32> to vector<8x32xf32>
    %81 = arith.mulf %79, %60 : vector<8x32xf32>
    %82 = arith.mulf %78, %77 : vector<8x32xf32>
    %83 = arith.addf %81, %82 : vector<8x32xf32>
    %84 = math.tanh %83 : vector<8x32xf32>
    %85 = arith.mulf %80, %84 : vector<8x32xf32>
    %c2_38 = arith.constant 2 : index
    %c0_39 = arith.constant 0 : index
    %c0_40 = arith.constant 0 : index
    %86 = vector.load %arg16[%c2_38, %c0_39, %c0_40] : memref<8x8x32xf32, #tpu.memory_space<vmem>>, vector<1x8x32xf32>
    %87 = vector.shape_cast %86 : vector<1x8x32xf32> to vector<8x32xf32>
    %88 = vector.shape_cast %85 : vector<8x32xf32> to vector<1x8x32xf32>
    tpu.vector_store %arg16[%c2_38, %c0_39, %c0_40], %88 {strides = array<i32>} : memref<8x8x32xf32, #tpu.memory_space<vmem>>, vector<1x8x32xf32>,
    %c3 = arith.constant 3 : index
    %c0_41 = arith.constant 0 : index
    %c0_42 = arith.constant 0 : index
    %89 = vector.load %arg15[%c3, %c0_41, %c0_42] : memref<8x8x128xf32, #tpu.memory_space<vmem>>, vector<1x8x128xf32>
    %90 = vector.shape_cast %89 : vector<1x8x128xf32> to vector<8x128xf32>
    %cst_43 = arith.constant dense<0.000000e+00> : vector<8x128xf32>
    %91 = tpu.matmul %85, %19, %cst_43 {dimension_numbers = #tpu.dot_dimension_numbers<[1], [0], [0], [1], [0, 0, 1, 1], [], []>} : vector<8x32xf32>, vector<32x128xf32>, vector<8x128xf32> -> vector<8x128xf32>
    %92 = arith.addf %90, %91 : vector<8x128xf32>
    %93 = vector.extract_strided_slice %92 {offsets = [0, 0], sizes = [8, 96], strides = [1, 1]} : vector<8x128xf32> to vector<8x96xf32>
    %94 = arith.negf %93 : vector<8x96xf32>
    %95 = math.exp %94 : vector<8x96xf32>
    %cst_44 = arith.constant 1.000000e+00 : f32
    %96 = vector.broadcast %cst_44 : f32 to vector<8x96xf32>
    %97 = arith.addf %96, %95 : vector<8x96xf32>
    %98 = arith.divf %96, %97 : vector<8x96xf32>
    %99 = vector.extract_strided_slice %92 {offsets = [0, 96], sizes = [8, 32], strides = [1, 1]} : vector<8x128xf32> to vector<8x32xf32>
    %100 = math.tanh %99 : vector<8x32xf32>
    %101 = vector.extract_strided_slice %98 {offsets = [0, 0], sizes = [8, 32], strides = [1, 1]} : vector<8x96xf32> to vector<8x32xf32>
    %102 = vector.extract_strided_slice %98 {offsets = [0, 32], sizes = [8, 32], strides = [1, 1]} : vector<8x96xf32> to vector<8x32xf32>
    %103 = vector.extract_strided_slice %98 {offsets = [0, 64], sizes = [8, 32], strides = [1, 1]} : vector<8x96xf32> to vector<8x32xf32>
    %104 = arith.mulf %102, %83 : vector<8x32xf32>
    %105 = arith.mulf %101, %100 : vector<8x32xf32>
    %106 = arith.addf %104, %105 : vector<8x32xf32>
    %107 = math.tanh %106 : vector<8x32xf32>
    %108 = arith.mulf %103, %107 : vector<8x32xf32>
    %c3_45 = arith.constant 3 : index
    %c0_46 = arith.constant 0 : index
    %c0_47 = arith.constant 0 : index
    %109 = vector.load %arg16[%c3_45, %c0_46, %c0_47] : memref<8x8x32xf32, #tpu.memory_space<vmem>>, vector<1x8x32xf32>
    %110 = vector.shape_cast %109 : vector<1x8x32xf32> to vector<8x32xf32>
    %111 = vector.shape_cast %108 : vector<8x32xf32> to vector<1x8x32xf32>
    tpu.vector_store %arg16[%c3_45, %c0_46, %c0_47], %111 {strides = array<i32>} : memref<8x8x32xf32, #tpu.memory_space<vmem>>, vector<1x8x32xf32>,
    %c4 = arith.constant 4 : index
    %c0_48 = arith.constant 0 : index
    %c0_49 = arith.constant 0 : index
    %112 = vector.load %arg15[%c4, %c0_48, %c0_49] : memref<8x8x128xf32, #tpu.memory_space<vmem>>, vector<1x8x128xf32>
    %113 = vector.shape_cast %112 : vector<1x8x128xf32> to vector<8x128xf32>
    %cst_50 = arith.constant dense<0.000000e+00> : vector<8x128xf32>
    %114 = tpu.matmul %108, %19, %cst_50 {dimension_numbers = #tpu.dot_dimension_numbers<[1], [0], [0], [1], [0, 0, 1, 1], [], []>} : vector<8x32xf32>, vector<32x128xf32>, vector<8x128xf32> -> vector<8x128xf32>
    %115 = arith.addf %113, %114 : vector<8x128xf32>
    %116 = vector.extract_strided_slice %115 {offsets = [0, 0], sizes = [8, 96], strides = [1, 1]} : vector<8x128xf32> to vector<8x96xf32>
    %117 = arith.negf %116 : vector<8x96xf32>
    %118 = math.exp %117 : vector<8x96xf32>
    %cst_51 = arith.constant 1.000000e+00 : f32
    %119 = vector.broadcast %cst_51 : f32 to vector<8x96xf32>
    %120 = arith.addf %119, %118 : vector<8x96xf32>
    %121 = arith.divf %119, %120 : vector<8x96xf32>
    %122 = vector.extract_strided_slice %115 {offsets = [0, 96], sizes = [8, 32], strides = [1, 1]} : vector<8x128xf32> to vector<8x32xf32>
    %123 = math.tanh %122 : vector<8x32xf32>
    %124 = vector.extract_strided_slice %121 {offsets = [0, 0], sizes = [8, 32], strides = [1, 1]} : vector<8x96xf32> to vector<8x32xf32>
    %125 = vector.extract_strided_slice %121 {offsets = [0, 32], sizes = [8, 32], strides = [1, 1]} : vector<8x96xf32> to vector<8x32xf32>
    %126 = vector.extract_strided_slice %121 {offsets = [0, 64], sizes = [8, 32], strides = [1, 1]} : vector<8x96xf32> to vector<8x32xf32>
    %127 = arith.mulf %125, %106 : vector<8x32xf32>
    %128 = arith.mulf %124, %123 : vector<8x32xf32>
    %129 = arith.addf %127, %128 : vector<8x32xf32>
    %130 = math.tanh %129 : vector<8x32xf32>
    %131 = arith.mulf %126, %130 : vector<8x32xf32>
    %c4_52 = arith.constant 4 : index
    %c0_53 = arith.constant 0 : index
    %c0_54 = arith.constant 0 : index
    %132 = vector.load %arg16[%c4_52, %c0_53, %c0_54] : memref<8x8x32xf32, #tpu.memory_space<vmem>>, vector<1x8x32xf32>
    %133 = vector.shape_cast %132 : vector<1x8x32xf32> to vector<8x32xf32>
    %134 = vector.shape_cast %131 : vector<8x32xf32> to vector<1x8x32xf32>
    tpu.vector_store %arg16[%c4_52, %c0_53, %c0_54], %134 {strides = array<i32>} : memref<8x8x32xf32, #tpu.memory_space<vmem>>, vector<1x8x32xf32>,
    %c5 = arith.constant 5 : index
    %c0_55 = arith.constant 0 : index
    %c0_56 = arith.constant 0 : index
    %135 = vector.load %arg15[%c5, %c0_55, %c0_56] : memref<8x8x128xf32, #tpu.memory_space<vmem>>, vector<1x8x128xf32>
    %136 = vector.shape_cast %135 : vector<1x8x128xf32> to vector<8x128xf32>
    %cst_57 = arith.constant dense<0.000000e+00> : vector<8x128xf32>
    %137 = tpu.matmul %131, %19, %cst_57 {dimension_numbers = #tpu.dot_dimension_numbers<[1], [0], [0], [1], [0, 0, 1, 1], [], []>} : vector<8x32xf32>, vector<32x128xf32>, vector<8x128xf32> -> vector<8x128xf32>
    %138 = arith.addf %136, %137 : vector<8x128xf32>
    %139 = vector.extract_strided_slice %138 {offsets = [0, 0], sizes = [8, 96], strides = [1, 1]} : vector<8x128xf32> to vector<8x96xf32>
    %140 = arith.negf %139 : vector<8x96xf32>
    %141 = math.exp %140 : vector<8x96xf32>
    %cst_58 = arith.constant 1.000000e+00 : f32
    %142 = vector.broadcast %cst_58 : f32 to vector<8x96xf32>
    %143 = arith.addf %142, %141 : vector<8x96xf32>
    %144 = arith.divf %142, %143 : vector<8x96xf32>
    %145 = vector.extract_strided_slice %138 {offsets = [0, 96], sizes = [8, 32], strides = [1, 1]} : vector<8x128xf32> to vector<8x32xf32>
    %146 = math.tanh %145 : vector<8x32xf32>
    %147 = vector.extract_strided_slice %144 {offsets = [0, 0], sizes = [8, 32], strides = [1, 1]} : vector<8x96xf32> to vector<8x32xf32>
    %148 = vector.extract_strided_slice %144 {offsets = [0, 32], sizes = [8, 32], strides = [1, 1]} : vector<8x96xf32> to vector<8x32xf32>
    %149 = vector.extract_strided_slice %144 {offsets = [0, 64], sizes = [8, 32], strides = [1, 1]} : vector<8x96xf32> to vector<8x32xf32>
    %150 = arith.mulf %148, %129 : vector<8x32xf32>
    %151 = arith.mulf %147, %146 : vector<8x32xf32>
    %152 = arith.addf %150, %151 : vector<8x32xf32>
    %153 = math.tanh %152 : vector<8x32xf32>
    %154 = arith.mulf %149, %153 : vector<8x32xf32>
    %c5_59 = arith.constant 5 : index
    %c0_60 = arith.constant 0 : index
    %c0_61 = arith.constant 0 : index
    %155 = vector.load %arg16[%c5_59, %c0_60, %c0_61] : memref<8x8x32xf32, #tpu.memory_space<vmem>>, vector<1x8x32xf32>
    %156 = vector.shape_cast %155 : vector<1x8x32xf32> to vector<8x32xf32>
    %157 = vector.shape_cast %154 : vector<8x32xf32> to vector<1x8x32xf32>
    tpu.vector_store %arg16[%c5_59, %c0_60, %c0_61], %157 {strides = array<i32>} : memref<8x8x32xf32, #tpu.memory_space<vmem>>, vector<1x8x32xf32>,
    %c6 = arith.constant 6 : index
    %c0_62 = arith.constant 0 : index
    %c0_63 = arith.constant 0 : index
    %158 = vector.load %arg15[%c6, %c0_62, %c0_63] : memref<8x8x128xf32, #tpu.memory_space<vmem>>, vector<1x8x128xf32>
    %159 = vector.shape_cast %158 : vector<1x8x128xf32> to vector<8x128xf32>
    %cst_64 = arith.constant dense<0.000000e+00> : vector<8x128xf32>
    %160 = tpu.matmul %154, %19, %cst_64 {dimension_numbers = #tpu.dot_dimension_numbers<[1], [0], [0], [1], [0, 0, 1, 1], [], []>} : vector<8x32xf32>, vector<32x128xf32>, vector<8x128xf32> -> vector<8x128xf32>
    %161 = arith.addf %159, %160 : vector<8x128xf32>
    %162 = vector.extract_strided_slice %161 {offsets = [0, 0], sizes = [8, 96], strides = [1, 1]} : vector<8x128xf32> to vector<8x96xf32>
    %163 = arith.negf %162 : vector<8x96xf32>
    %164 = math.exp %163 : vector<8x96xf32>
    %cst_65 = arith.constant 1.000000e+00 : f32
    %165 = vector.broadcast %cst_65 : f32 to vector<8x96xf32>
    %166 = arith.addf %165, %164 : vector<8x96xf32>
    %167 = arith.divf %165, %166 : vector<8x96xf32>
    %168 = vector.extract_strided_slice %161 {offsets = [0, 96], sizes = [8, 32], strides = [1, 1]} : vector<8x128xf32> to vector<8x32xf32>
    %169 = math.tanh %168 : vector<8x32xf32>
    %170 = vector.extract_strided_slice %167 {offsets = [0, 0], sizes = [8, 32], strides = [1, 1]} : vector<8x96xf32> to vector<8x32xf32>
    %171 = vector.extract_strided_slice %167 {offsets = [0, 32], sizes = [8, 32], strides = [1, 1]} : vector<8x96xf32> to vector<8x32xf32>
    %172 = vector.extract_strided_slice %167 {offsets = [0, 64], sizes = [8, 32], strides = [1, 1]} : vector<8x96xf32> to vector<8x32xf32>
    %173 = arith.mulf %171, %152 : vector<8x32xf32>
    %174 = arith.mulf %170, %169 : vector<8x32xf32>
    %175 = arith.addf %173, %174 : vector<8x32xf32>
    %176 = math.tanh %175 : vector<8x32xf32>
    %177 = arith.mulf %172, %176 : vector<8x32xf32>
    %c6_66 = arith.constant 6 : index
    %c0_67 = arith.constant 0 : index
    %c0_68 = arith.constant 0 : index
    %178 = vector.load %arg16[%c6_66, %c0_67, %c0_68] : memref<8x8x32xf32, #tpu.memory_space<vmem>>, vector<1x8x32xf32>
    %179 = vector.shape_cast %178 : vector<1x8x32xf32> to vector<8x32xf32>
    %180 = vector.shape_cast %177 : vector<8x32xf32> to vector<1x8x32xf32>
    tpu.vector_store %arg16[%c6_66, %c0_67, %c0_68], %180 {strides = array<i32>} : memref<8x8x32xf32, #tpu.memory_space<vmem>>, vector<1x8x32xf32>,
    %c7 = arith.constant 7 : index
    %c0_69 = arith.constant 0 : index
    %c0_70 = arith.constant 0 : index
    %181 = vector.load %arg15[%c7, %c0_69, %c0_70] : memref<8x8x128xf32, #tpu.memory_space<vmem>>, vector<1x8x128xf32>
    %182 = vector.shape_cast %181 : vector<1x8x128xf32> to vector<8x128xf32>
    %cst_71 = arith.constant dense<0.000000e+00> : vector<8x128xf32>
    %183 = tpu.matmul %177, %19, %cst_71 {dimension_numbers = #tpu.dot_dimension_numbers<[1], [0], [0], [1], [0, 0, 1, 1], [], []>} : vector<8x32xf32>, vector<32x128xf32>, vector<8x128xf32> -> vector<8x128xf32>
    %184 = arith.addf %182, %183 : vector<8x128xf32>
    %185 = vector.extract_strided_slice %184 {offsets = [0, 0], sizes = [8, 96], strides = [1, 1]} : vector<8x128xf32> to vector<8x96xf32>
    %186 = arith.negf %185 : vector<8x96xf32>
    %187 = math.exp %186 : vector<8x96xf32>
    %cst_72 = arith.constant 1.000000e+00 : f32
    %188 = vector.broadcast %cst_72 : f32 to vector<8x96xf32>
    %189 = arith.addf %188, %187 : vector<8x96xf32>
    %190 = arith.divf %188, %189 : vector<8x96xf32>
    %191 = vector.extract_strided_slice %184 {offsets = [0, 96], sizes = [8, 32], strides = [1, 1]} : vector<8x128xf32> to vector<8x32xf32>
    %192 = math.tanh %191 : vector<8x32xf32>
    %193 = vector.extract_strided_slice %190 {offsets = [0, 0], sizes = [8, 32], strides = [1, 1]} : vector<8x96xf32> to vector<8x32xf32>
    %194 = vector.extract_strided_slice %190 {offsets = [0, 32], sizes = [8, 32], strides = [1, 1]} : vector<8x96xf32> to vector<8x32xf32>
    %195 = vector.extract_strided_slice %190 {offsets = [0, 64], sizes = [8, 32], strides = [1, 1]} : vector<8x96xf32> to vector<8x32xf32>
    %196 = arith.mulf %194, %175 : vector<8x32xf32>
    %197 = arith.mulf %193, %192 : vector<8x32xf32>
    %198 = arith.addf %196, %197 : vector<8x32xf32>
    %199 = math.tanh %198 : vector<8x32xf32>
    %200 = arith.mulf %195, %199 : vector<8x32xf32>
    %c7_73 = arith.constant 7 : index
    %c0_74 = arith.constant 0 : index
    %c0_75 = arith.constant 0 : index
    %201 = vector.load %arg16[%c7_73, %c0_74, %c0_75] : memref<8x8x32xf32, #tpu.memory_space<vmem>>, vector<1x8x32xf32>
    %202 = vector.shape_cast %201 : vector<1x8x32xf32> to vector<8x32xf32>
    %203 = vector.shape_cast %200 : vector<8x32xf32> to vector<1x8x32xf32>
    tpu.vector_store %arg16[%c7_73, %c0_74, %c0_75], %203 {strides = array<i32>} : memref<8x8x32xf32, #tpu.memory_space<vmem>>, vector<1x8x32xf32>,
    %c0_76 = arith.constant 0 : index
    %c0_77 = arith.constant 0 : index
    %c0_78 = arith.constant 0 : index
    %204 = vector.load %arg13[%c0_76, %c0_77, %c0_78] : memref<2x8x32xf32, #tpu.memory_space<vmem>>, vector<1x8x32xf32>
    %205 = vector.shape_cast %204 : vector<1x8x32xf32> to vector<8x32xf32>
    %206 = vector.shape_cast %200 : vector<8x32xf32> to vector<1x8x32xf32>
    tpu.vector_store %arg13[%c0_76, %c0_77, %c0_78], %206 {strides = array<i32>} : memref<2x8x32xf32, #tpu.memory_space<vmem>>, vector<1x8x32xf32>,
    %c0_79 = arith.constant 0 : index
    %c0_80 = arith.constant 0 : index
    %c0_81 = arith.constant 0 : index
    %207 = vector.load %arg14[%c0_79, %c0_80, %c0_81] : memref<2x8x32xf32, #tpu.memory_space<vmem>>, vector<1x8x32xf32>
    %208 = vector.shape_cast %207 : vector<1x8x32xf32> to vector<8x32xf32>
    %209 = vector.shape_cast %198 : vector<8x32xf32> to vector<1x8x32xf32>
    tpu.vector_store %arg14[%c0_79, %c0_80, %c0_81], %209 {strides = array<i32>} : memref<2x8x32xf32, #tpu.memory_space<vmem>>, vector<1x8x32xf32>,
    %c0_82 = arith.constant 0 : index
    %c0_83 = arith.constant 0 : index
    %c0_84 = arith.constant 0 : index
    %210 = vector.load %arg16[%c0_82, %c0_83, %c0_84] : memref<8x8x32xf32, #tpu.memory_space<vmem>>, vector<8x8x32xf32>
    %211 = vector.shape_cast %210 : vector<8x8x32xf32> to vector<64x32xf32>
    %c0_85 = arith.constant 0 : index
    %c0_86 = arith.constant 0 : index
    %212 = vector.load %arg5[%c0_85, %c0_86] : memref<32x128xf32, #tpu.memory_space<vmem>>, vector<32x128xf32>
    %cst_87 = arith.constant dense<0.000000e+00> : vector<64x128xf32>
    %213 = tpu.matmul %211, %212, %cst_87 {dimension_numbers = #tpu.dot_dimension_numbers<[1], [0], [0], [1], [0, 0, 1, 1], [], []>} : vector<64x32xf32>, vector<32x128xf32>, vector<64x128xf32> -> vector<64x128xf32>
    %c0_88 = arith.constant 0 : index
    %c0_89 = arith.constant 0 : index
    %214 = vector.load %arg7[%c0_88, %c0_89] : memref<1x128xf32, #tpu.memory_space<vmem>>, vector<1x128xf32>
    %215 = vector.broadcast %214 : vector<1x128xf32> to vector<64x128xf32>
    %216 = arith.addf %213, %215 : vector<64x128xf32>
    %217 = vector.shape_cast %216 : vector<64x128xf32> to vector<8x8x128xf32>
    %c0_90 = arith.constant 0 : index
    %c0_91 = arith.constant 0 : index
    %c0_92 = arith.constant 0 : index
    %218 = vector.load %arg15[%c0_90, %c0_91, %c0_92] : memref<8x8x128xf32, #tpu.memory_space<vmem>>, vector<8x8x128xf32>
    tpu.vector_store %arg15[%c0_90, %c0_91, %c0_92], %217 {strides = array<i32>} : memref<8x8x128xf32, #tpu.memory_space<vmem>>, vector<8x8x128xf32>,
    %c1_93 = arith.constant 1 : index
    %c0_94 = arith.constant 0 : index
    %c0_95 = arith.constant 0 : index
    %219 = vector.load %arg10[%c1_93, %c0_94, %c0_95] : memref<2x8x32xf32, #tpu.memory_space<vmem>>, vector<1x8x32xf32>
    %220 = vector.shape_cast %219 : vector<1x8x32xf32> to vector<8x32xf32>
    %c1_96 = arith.constant 1 : index
    %c0_97 = arith.constant 0 : index
    %c0_98 = arith.constant 0 : index
    %221 = vector.load %arg11[%c1_96, %c0_97, %c0_98] : memref<2x8x32xf32, #tpu.memory_space<vmem>>, vector<1x8x32xf32>
    %222 = vector.shape_cast %221 : vector<1x8x32xf32> to vector<8x32xf32>
    %c0_99 = arith.constant 0 : index
    %c0_100 = arith.constant 0 : index
    %223 = vector.load %arg6[%c0_99, %c0_100] : memref<32x128xf32, #tpu.memory_space<vmem>>, vector<32x128xf32>
    %c0_101 = arith.constant 0 : index
    %c0_102 = arith.constant 0 : index
    %c0_103 = arith.constant 0 : index
    %224 = vector.load %arg15[%c0_101, %c0_102, %c0_103] : memref<8x8x128xf32, #tpu.memory_space<vmem>>, vector<1x8x128xf32>
    %225 = vector.shape_cast %224 : vector<1x8x128xf32> to vector<8x128xf32>
    %cst_104 = arith.constant dense<0.000000e+00> : vector<8x128xf32>
    %226 = tpu.matmul %220, %223, %cst_104 {dimension_numbers = #tpu.dot_dimension_numbers<[1], [0], [0], [1], [0, 0, 1, 1], [], []>} : vector<8x32xf32>, vector<32x128xf32>, vector<8x128xf32> -> vector<8x128xf32>
    %227 = arith.addf %225, %226 : vector<8x128xf32>
    %228 = vector.extract_strided_slice %227 {offsets = [0, 0], sizes = [8, 96], strides = [1, 1]} : vector<8x128xf32> to vector<8x96xf32>
    %229 = arith.negf %228 : vector<8x96xf32>
    %230 = math.exp %229 : vector<8x96xf32>
    %cst_105 = arith.constant 1.000000e+00 : f32
    %231 = vector.broadcast %cst_105 : f32 to vector<8x96xf32>
    %232 = arith.addf %231, %230 : vector<8x96xf32>
    %233 = arith.divf %231, %232 : vector<8x96xf32>
    %234 = vector.extract_strided_slice %227 {offsets = [0, 96], sizes = [8, 32], strides = [1, 1]} : vector<8x128xf32> to vector<8x32xf32>
    %235 = math.tanh %234 : vector<8x32xf32>
    %236 = vector.extract_strided_slice %233 {offsets = [0, 0], sizes = [8, 32], strides = [1, 1]} : vector<8x96xf32> to vector<8x32xf32>
    %237 = vector.extract_strided_slice %233 {offsets = [0, 32], sizes = [8, 32], strides = [1, 1]} : vector<8x96xf32> to vector<8x32xf32>
    %238 = vector.extract_strided_slice %233 {offsets = [0, 64], sizes = [8, 32], strides = [1, 1]} : vector<8x96xf32> to vector<8x32xf32>
    %239 = arith.mulf %237, %222 : vector<8x32xf32>
    %240 = arith.mulf %236, %235 : vector<8x32xf32>
    %241 = arith.addf %239, %240 : vector<8x32xf32>
    %242 = math.tanh %241 : vector<8x32xf32>
    %243 = arith.mulf %238, %242 : vector<8x32xf32>
    %c1_106 = arith.constant 1 : index
    %c0_107 = arith.constant 0 : index
    %c0_108 = arith.constant 0 : index
    %244 = vector.load %arg15[%c1_106, %c0_107, %c0_108] : memref<8x8x128xf32, #tpu.memory_space<vmem>>, vector<1x8x128xf32>
    %245 = vector.shape_cast %244 : vector<1x8x128xf32> to vector<8x128xf32>
    %cst_109 = arith.constant dense<0.000000e+00> : vector<8x128xf32>
    %246 = tpu.matmul %243, %223, %cst_109 {dimension_numbers = #tpu.dot_dimension_numbers<[1], [0], [0], [1], [0, 0, 1, 1], [], []>} : vector<8x32xf32>, vector<32x128xf32>, vector<8x128xf32> -> vector<8x128xf32>
    %247 = arith.addf %245, %246 : vector<8x128xf32>
    %248 = vector.extract_strided_slice %247 {offsets = [0, 0], sizes = [8, 96], strides = [1, 1]} : vector<8x128xf32> to vector<8x96xf32>
    %249 = arith.negf %248 : vector<8x96xf32>
    %250 = math.exp %249 : vector<8x96xf32>
    %cst_110 = arith.constant 1.000000e+00 : f32
    %251 = vector.broadcast %cst_110 : f32 to vector<8x96xf32>
    %252 = arith.addf %251, %250 : vector<8x96xf32>
    %253 = arith.divf %251, %252 : vector<8x96xf32>
    %254 = vector.extract_strided_slice %247 {offsets = [0, 96], sizes = [8, 32], strides = [1, 1]} : vector<8x128xf32> to vector<8x32xf32>
    %255 = math.tanh %254 : vector<8x32xf32>
    %256 = vector.extract_strided_slice %253 {offsets = [0, 0], sizes = [8, 32], strides = [1, 1]} : vector<8x96xf32> to vector<8x32xf32>
    %257 = vector.extract_strided_slice %253 {offsets = [0, 32], sizes = [8, 32], strides = [1, 1]} : vector<8x96xf32> to vector<8x32xf32>
    %258 = vector.extract_strided_slice %253 {offsets = [0, 64], sizes = [8, 32], strides = [1, 1]} : vector<8x96xf32> to vector<8x32xf32>
    %259 = arith.mulf %257, %241 : vector<8x32xf32>
    %260 = arith.mulf %256, %255 : vector<8x32xf32>
    %261 = arith.addf %259, %260 : vector<8x32xf32>
    %262 = math.tanh %261 : vector<8x32xf32>
    %263 = arith.mulf %258, %262 : vector<8x32xf32>
    %c2_111 = arith.constant 2 : index
    %c0_112 = arith.constant 0 : index
    %c0_113 = arith.constant 0 : index
    %264 = vector.load %arg15[%c2_111, %c0_112, %c0_113] : memref<8x8x128xf32, #tpu.memory_space<vmem>>, vector<1x8x128xf32>
    %265 = vector.shape_cast %264 : vector<1x8x128xf32> to vector<8x128xf32>
    %cst_114 = arith.constant dense<0.000000e+00> : vector<8x128xf32>
    %266 = tpu.matmul %263, %223, %cst_114 {dimension_numbers = #tpu.dot_dimension_numbers<[1], [0], [0], [1], [0, 0, 1, 1], [], []>} : vector<8x32xf32>, vector<32x128xf32>, vector<8x128xf32> -> vector<8x128xf32>
    %267 = arith.addf %265, %266 : vector<8x128xf32>
    %268 = vector.extract_strided_slice %267 {offsets = [0, 0], sizes = [8, 96], strides = [1, 1]} : vector<8x128xf32> to vector<8x96xf32>
    %269 = arith.negf %268 : vector<8x96xf32>
    %270 = math.exp %269 : vector<8x96xf32>
    %cst_115 = arith.constant 1.000000e+00 : f32
    %271 = vector.broadcast %cst_115 : f32 to vector<8x96xf32>
    %272 = arith.addf %271, %270 : vector<8x96xf32>
    %273 = arith.divf %271, %272 : vector<8x96xf32>
    %274 = vector.extract_strided_slice %267 {offsets = [0, 96], sizes = [8, 32], strides = [1, 1]} : vector<8x128xf32> to vector<8x32xf32>
    %275 = math.tanh %274 : vector<8x32xf32>
    %276 = vector.extract_strided_slice %273 {offsets = [0, 0], sizes = [8, 32], strides = [1, 1]} : vector<8x96xf32> to vector<8x32xf32>
    %277 = vector.extract_strided_slice %273 {offsets = [0, 32], sizes = [8, 32], strides = [1, 1]} : vector<8x96xf32> to vector<8x32xf32>
    %278 = vector.extract_strided_slice %273 {offsets = [0, 64], sizes = [8, 32], strides = [1, 1]} : vector<8x96xf32> to vector<8x32xf32>
    %279 = arith.mulf %277, %261 : vector<8x32xf32>
    %280 = arith.mulf %276, %275 : vector<8x32xf32>
    %281 = arith.addf %279, %280 : vector<8x32xf32>
    %282 = math.tanh %281 : vector<8x32xf32>
    %283 = arith.mulf %278, %282 : vector<8x32xf32>
    %c3_116 = arith.constant 3 : index
    %c0_117 = arith.constant 0 : index
    %c0_118 = arith.constant 0 : index
    %284 = vector.load %arg15[%c3_116, %c0_117, %c0_118] : memref<8x8x128xf32, #tpu.memory_space<vmem>>, vector<1x8x128xf32>
    %285 = vector.shape_cast %284 : vector<1x8x128xf32> to vector<8x128xf32>
    %cst_119 = arith.constant dense<0.000000e+00> : vector<8x128xf32>
    %286 = tpu.matmul %283, %223, %cst_119 {dimension_numbers = #tpu.dot_dimension_numbers<[1], [0], [0], [1], [0, 0, 1, 1], [], []>} : vector<8x32xf32>, vector<32x128xf32>, vector<8x128xf32> -> vector<8x128xf32>
    %287 = arith.addf %285, %286 : vector<8x128xf32>
    %288 = vector.extract_strided_slice %287 {offsets = [0, 0], sizes = [8, 96], strides = [1, 1]} : vector<8x128xf32> to vector<8x96xf32>
    %289 = arith.negf %288 : vector<8x96xf32>
    %290 = math.exp %289 : vector<8x96xf32>
    %cst_120 = arith.constant 1.000000e+00 : f32
    %291 = vector.broadcast %cst_120 : f32 to vector<8x96xf32>
    %292 = arith.addf %291, %290 : vector<8x96xf32>
    %293 = arith.divf %291, %292 : vector<8x96xf32>
    %294 = vector.extract_strided_slice %287 {offsets = [0, 96], sizes = [8, 32], strides = [1, 1]} : vector<8x128xf32> to vector<8x32xf32>
    %295 = math.tanh %294 : vector<8x32xf32>
    %296 = vector.extract_strided_slice %293 {offsets = [0, 0], sizes = [8, 32], strides = [1, 1]} : vector<8x96xf32> to vector<8x32xf32>
    %297 = vector.extract_strided_slice %293 {offsets = [0, 32], sizes = [8, 32], strides = [1, 1]} : vector<8x96xf32> to vector<8x32xf32>
    %298 = vector.extract_strided_slice %293 {offsets = [0, 64], sizes = [8, 32], strides = [1, 1]} : vector<8x96xf32> to vector<8x32xf32>
    %299 = arith.mulf %297, %281 : vector<8x32xf32>
    %300 = arith.mulf %296, %295 : vector<8x32xf32>
    %301 = arith.addf %299, %300 : vector<8x32xf32>
    %302 = math.tanh %301 : vector<8x32xf32>
    %303 = arith.mulf %298, %302 : vector<8x32xf32>
    %c4_121 = arith.constant 4 : index
    %c0_122 = arith.constant 0 : index
    %c0_123 = arith.constant 0 : index
    %304 = vector.load %arg15[%c4_121, %c0_122, %c0_123] : memref<8x8x128xf32, #tpu.memory_space<vmem>>, vector<1x8x128xf32>
    %305 = vector.shape_cast %304 : vector<1x8x128xf32> to vector<8x128xf32>
    %cst_124 = arith.constant dense<0.000000e+00> : vector<8x128xf32>
    %306 = tpu.matmul %303, %223, %cst_124 {dimension_numbers = #tpu.dot_dimension_numbers<[1], [0], [0], [1], [0, 0, 1, 1], [], []>} : vector<8x32xf32>, vector<32x128xf32>, vector<8x128xf32> -> vector<8x128xf32>
    %307 = arith.addf %305, %306 : vector<8x128xf32>
    %308 = vector.extract_strided_slice %307 {offsets = [0, 0], sizes = [8, 96], strides = [1, 1]} : vector<8x128xf32> to vector<8x96xf32>
    %309 = arith.negf %308 : vector<8x96xf32>
    %310 = math.exp %309 : vector<8x96xf32>
    %cst_125 = arith.constant 1.000000e+00 : f32
    %311 = vector.broadcast %cst_125 : f32 to vector<8x96xf32>
    %312 = arith.addf %311, %310 : vector<8x96xf32>
    %313 = arith.divf %311, %312 : vector<8x96xf32>
    %314 = vector.extract_strided_slice %307 {offsets = [0, 96], sizes = [8, 32], strides = [1, 1]} : vector<8x128xf32> to vector<8x32xf32>
    %315 = math.tanh %314 : vector<8x32xf32>
    %316 = vector.extract_strided_slice %313 {offsets = [0, 0], sizes = [8, 32], strides = [1, 1]} : vector<8x96xf32> to vector<8x32xf32>
    %317 = vector.extract_strided_slice %313 {offsets = [0, 32], sizes = [8, 32], strides = [1, 1]} : vector<8x96xf32> to vector<8x32xf32>
    %318 = vector.extract_strided_slice %313 {offsets = [0, 64], sizes = [8, 32], strides = [1, 1]} : vector<8x96xf32> to vector<8x32xf32>
    %319 = arith.mulf %317, %301 : vector<8x32xf32>
    %320 = arith.mulf %316, %315 : vector<8x32xf32>
    %321 = arith.addf %319, %320 : vector<8x32xf32>
    %322 = math.tanh %321 : vector<8x32xf32>
    %323 = arith.mulf %318, %322 : vector<8x32xf32>
    %c5_126 = arith.constant 5 : index
    %c0_127 = arith.constant 0 : index
    %c0_128 = arith.constant 0 : index
    %324 = vector.load %arg15[%c5_126, %c0_127, %c0_128] : memref<8x8x128xf32, #tpu.memory_space<vmem>>, vector<1x8x128xf32>
    %325 = vector.shape_cast %324 : vector<1x8x128xf32> to vector<8x128xf32>
    %cst_129 = arith.constant dense<0.000000e+00> : vector<8x128xf32>
    %326 = tpu.matmul %323, %223, %cst_129 {dimension_numbers = #tpu.dot_dimension_numbers<[1], [0], [0], [1], [0, 0, 1, 1], [], []>} : vector<8x32xf32>, vector<32x128xf32>, vector<8x128xf32> -> vector<8x128xf32>
    %327 = arith.addf %325, %326 : vector<8x128xf32>
    %328 = vector.extract_strided_slice %327 {offsets = [0, 0], sizes = [8, 96], strides = [1, 1]} : vector<8x128xf32> to vector<8x96xf32>
    %329 = arith.negf %328 : vector<8x96xf32>
    %330 = math.exp %329 : vector<8x96xf32>
    %cst_130 = arith.constant 1.000000e+00 : f32
    %331 = vector.broadcast %cst_130 : f32 to vector<8x96xf32>
    %332 = arith.addf %331, %330 : vector<8x96xf32>
    %333 = arith.divf %331, %332 : vector<8x96xf32>
    %334 = vector.extract_strided_slice %327 {offsets = [0, 96], sizes = [8, 32], strides = [1, 1]} : vector<8x128xf32> to vector<8x32xf32>
    %335 = math.tanh %334 : vector<8x32xf32>
    %336 = vector.extract_strided_slice %333 {offsets = [0, 0], sizes = [8, 32], strides = [1, 1]} : vector<8x96xf32> to vector<8x32xf32>
    %337 = vector.extract_strided_slice %333 {offsets = [0, 32], sizes = [8, 32], strides = [1, 1]} : vector<8x96xf32> to vector<8x32xf32>
    %338 = vector.extract_strided_slice %333 {offsets = [0, 64], sizes = [8, 32], strides = [1, 1]} : vector<8x96xf32> to vector<8x32xf32>
    %339 = arith.mulf %337, %321 : vector<8x32xf32>
    %340 = arith.mulf %336, %335 : vector<8x32xf32>
    %341 = arith.addf %339, %340 : vector<8x32xf32>
    %342 = math.tanh %341 : vector<8x32xf32>
    %343 = arith.mulf %338, %342 : vector<8x32xf32>
    %c6_131 = arith.constant 6 : index
    %c0_132 = arith.constant 0 : index
    %c0_133 = arith.constant 0 : index
    %344 = vector.load %arg15[%c6_131, %c0_132, %c0_133] : memref<8x8x128xf32, #tpu.memory_space<vmem>>, vector<1x8x128xf32>
    %345 = vector.shape_cast %344 : vector<1x8x128xf32> to vector<8x128xf32>
    %cst_134 = arith.constant dense<0.000000e+00> : vector<8x128xf32>
    %346 = tpu.matmul %343, %223, %cst_134 {dimension_numbers = #tpu.dot_dimension_numbers<[1], [0], [0], [1], [0, 0, 1, 1], [], []>} : vector<8x32xf32>, vector<32x128xf32>, vector<8x128xf32> -> vector<8x128xf32>
    %347 = arith.addf %345, %346 : vector<8x128xf32>
    %348 = vector.extract_strided_slice %347 {offsets = [0, 0], sizes = [8, 96], strides = [1, 1]} : vector<8x128xf32> to vector<8x96xf32>
    %349 = arith.negf %348 : vector<8x96xf32>
    %350 = math.exp %349 : vector<8x96xf32>
    %cst_135 = arith.constant 1.000000e+00 : f32
    %351 = vector.broadcast %cst_135 : f32 to vector<8x96xf32>
    %352 = arith.addf %351, %350 : vector<8x96xf32>
    %353 = arith.divf %351, %352 : vector<8x96xf32>
    %354 = vector.extract_strided_slice %347 {offsets = [0, 96], sizes = [8, 32], strides = [1, 1]} : vector<8x128xf32> to vector<8x32xf32>
    %355 = math.tanh %354 : vector<8x32xf32>
    %356 = vector.extract_strided_slice %353 {offsets = [0, 0], sizes = [8, 32], strides = [1, 1]} : vector<8x96xf32> to vector<8x32xf32>
    %357 = vector.extract_strided_slice %353 {offsets = [0, 32], sizes = [8, 32], strides = [1, 1]} : vector<8x96xf32> to vector<8x32xf32>
    %358 = vector.extract_strided_slice %353 {offsets = [0, 64], sizes = [8, 32], strides = [1, 1]} : vector<8x96xf32> to vector<8x32xf32>
    %359 = arith.mulf %357, %341 : vector<8x32xf32>
    %360 = arith.mulf %356, %355 : vector<8x32xf32>
    %361 = arith.addf %359, %360 : vector<8x32xf32>
    %362 = math.tanh %361 : vector<8x32xf32>
    %363 = arith.mulf %358, %362 : vector<8x32xf32>
    %c7_136 = arith.constant 7 : index
    %c0_137 = arith.constant 0 : index
    %c0_138 = arith.constant 0 : index
    %364 = vector.load %arg15[%c7_136, %c0_137, %c0_138] : memref<8x8x128xf32, #tpu.memory_space<vmem>>, vector<1x8x128xf32>
    %365 = vector.shape_cast %364 : vector<1x8x128xf32> to vector<8x128xf32>
    %cst_139 = arith.constant dense<0.000000e+00> : vector<8x128xf32>
    %366 = tpu.matmul %363, %223, %cst_139 {dimension_numbers = #tpu.dot_dimension_numbers<[1], [0], [0], [1], [0, 0, 1, 1], [], []>} : vector<8x32xf32>, vector<32x128xf32>, vector<8x128xf32> -> vector<8x128xf32>
    %367 = arith.addf %365, %366 : vector<8x128xf32>
    %368 = vector.extract_strided_slice %367 {offsets = [0, 0], sizes = [8, 96], strides = [1, 1]} : vector<8x128xf32> to vector<8x96xf32>
    %369 = arith.negf %368 : vector<8x96xf32>
    %370 = math.exp %369 : vector<8x96xf32>
    %cst_140 = arith.constant 1.000000e+00 : f32
    %371 = vector.broadcast %cst_140 : f32 to vector<8x96xf32>
    %372 = arith.addf %371, %370 : vector<8x96xf32>
    %373 = arith.divf %371, %372 : vector<8x96xf32>
    %374 = vector.extract_strided_slice %367 {offsets = [0, 96], sizes = [8, 32], strides = [1, 1]} : vector<8x128xf32> to vector<8x32xf32>
    %375 = math.tanh %374 : vector<8x32xf32>
    %376 = vector.extract_strided_slice %373 {offsets = [0, 0], sizes = [8, 32], strides = [1, 1]} : vector<8x96xf32> to vector<8x32xf32>
    %377 = vector.extract_strided_slice %373 {offsets = [0, 32], sizes = [8, 32], strides = [1, 1]} : vector<8x96xf32> to vector<8x32xf32>
    %378 = vector.extract_strided_slice %373 {offsets = [0, 64], sizes = [8, 32], strides = [1, 1]} : vector<8x96xf32> to vector<8x32xf32>
    %379 = arith.mulf %377, %361 : vector<8x32xf32>
    %380 = arith.mulf %376, %375 : vector<8x32xf32>
    %381 = arith.addf %379, %380 : vector<8x32xf32>
    %382 = math.tanh %381 : vector<8x32xf32>
    %383 = arith.mulf %378, %382 : vector<8x32xf32>
    %c1_141 = arith.constant 1 : index
    %c0_142 = arith.constant 0 : index
    %c0_143 = arith.constant 0 : index
    %384 = vector.load %arg13[%c1_141, %c0_142, %c0_143] : memref<2x8x32xf32, #tpu.memory_space<vmem>>, vector<1x8x32xf32>
    %385 = vector.shape_cast %384 : vector<1x8x32xf32> to vector<8x32xf32>
    %386 = vector.shape_cast %383 : vector<8x32xf32> to vector<1x8x32xf32>
    tpu.vector_store %arg13[%c1_141, %c0_142, %c0_143], %386 {strides = array<i32>} : memref<2x8x32xf32, #tpu.memory_space<vmem>>, vector<1x8x32xf32>,
    %c1_144 = arith.constant 1 : index
    %c0_145 = arith.constant 0 : index
    %c0_146 = arith.constant 0 : index
    %387 = vector.load %arg14[%c1_144, %c0_145, %c0_146] : memref<2x8x32xf32, #tpu.memory_space<vmem>>, vector<1x8x32xf32>
    %388 = vector.shape_cast %387 : vector<1x8x32xf32> to vector<8x32xf32>
    %389 = vector.shape_cast %381 : vector<8x32xf32> to vector<1x8x32xf32>
    tpu.vector_store %arg14[%c1_144, %c0_145, %c0_146], %389 {strides = array<i32>} : memref<2x8x32xf32, #tpu.memory_space<vmem>>, vector<1x8x32xf32>,
    %c0_147 = arith.constant 0 : index
    %c0_148 = arith.constant 0 : index
    %390 = vector.load %arg8[%c0_147, %c0_148] : memref<32x64xf32, #tpu.memory_space<vmem>>, vector<32x64xf32>
    %cst_149 = arith.constant dense<0.000000e+00> : vector<8x64xf32>
    %391 = tpu.matmul %383, %390, %cst_149 {dimension_numbers = #tpu.dot_dimension_numbers<[1], [0], [0], [1], [0, 0, 1, 1], [], []>} : vector<8x32xf32>, vector<32x64xf32>, vector<8x64xf32> -> vector<8x64xf32>
    %c0_150 = arith.constant 0 : index
    %c0_151 = arith.constant 0 : index
    %392 = vector.load %arg9[%c0_150, %c0_151] : memref<1x64xf32, #tpu.memory_space<vmem>>, vector<1x64xf32>
    %393 = vector.broadcast %392 : vector<1x64xf32> to vector<8x64xf32>
    %394 = arith.addf %391, %393 : vector<8x64xf32>
    %c0_152 = arith.constant 0 : index
    %c0_153 = arith.constant 0 : index
    %395 = vector.load %arg12[%c0_152, %c0_153] : memref<8x64xf32, #tpu.memory_space<vmem>>, vector<8x64xf32>
    tpu.vector_store %arg12[%c0_152, %c0_153], %394 {strides = array<i32>} : memref<8x64xf32, #tpu.memory_space<vmem>>, vector<8x64xf32>,
    return
  }
}

</mosaic_0001>

<bundles_post_ra>
// kernel: rnn_forward.1
= control target key start
LH: loop header
LB: loop body
LE: loop exit
PB: predicated region body
PF: predicated region fallthrough
CT: control target
= control target key end

     0   :  { %20 = vsyncpa [#allocation5], 0  ;;  %s3747_s0 = inlined_call_operand.vmem [shape: s32[64,1], index: 0, kind: input, shape index: {}]   ;;  %s3748_s1 = inlined_call_operand.vmem [shape: f32[64,32], index: 1, kind: input, shape index: {}]   ;;  %s3749_s2 = inlined_call_operand.vmem [shape: f32[32,128], index: 2, kind: input, shape index: {}]   ;;  %s3750_s3 = inlined_call_operand.vmem [shape: f32[32,128], index: 3, kind: input, shape index: {}]   ;;  %s3751_s4 = inlined_call_operand.hbm [shape: f32[1,128], index: 4, kind: input, shape index: {}]   ;;  %s3752_s5 = inlined_call_operand.vmem [shape: f32[32,128], index: 5, kind: input, shape index: {}]   ;;  %s3753_s6 = inlined_call_operand.vmem [shape: f32[32,128], index: 6, kind: input, shape index: {}]   ;;  %s3754_s7 = inlined_call_operand.hbm [shape: f32[1,128], index: 7, kind: input, shape index: {}]   ;;  %s3755_s8 = inlined_call_operand.hbm [shape: f32[32,64], index: 8, kind: input, shape index: {}]   ;;  %s3756_s9 = inlined_call_operand.hbm [shape: f32[1,64], index: 9, kind: input, shape index: {}]   ;;  %s3757_s10 = inlined_call_operand.vmem [shape: f32[2,8,32], index: 10, kind: input, shape index: {}]   ;;  %s3758_s11 = inlined_call_operand.vmem [shape: f32[2,8,32], index: 11, kind: input, shape index: {}]   ;;  %s3759_s12 = inlined_call_operand.hbm [shape: f32[8,64], index: 12, kind: output, shape index: {0}]   ;;  %s3760_s13 = inlined_call_operand.hbm [shape: f32[2,8,32], index: 13, kind: output, shape index: {1}]   ;;  %s3761_s14 = inlined_call_operand.hbm [shape: f32[2,8,32], index: 14, kind: output, shape index: {2}]  }
   0x1   :  { %21 = vsyncpa [#allocation8], 0 }
   0x2   :  { %22 = vsyncpa [#allocation11], 0 }
   0x3   :  { %23 = vsyncpa [#allocation6], 0 }
   0x4   :  { %24 = vsyncpa [#allocation14], 0  ;;  %s3158_s29 = smov [#allocation7]   ;;  %s3159_s15 = smov [#allocation4]  }
   0x5   :  { %s53_s30 = sshll.u32 %s3158_s29, 4  ;;  %s39_s16 = sshll.u32 %s3159_s15, 4  ;;  %s54_s30 = int_to_ptr.vmem [resolvable:$true] %s53_s30  ;;  %s40_s16 = int_to_ptr.vmem [resolvable:$true] %s39_s16 }
   0x6   :  { %s3016_s17 = scalar_lea.vmem %s54_s30, 16  ;;  %s3020_s18 = scalar_lea.vmem %s54_s30, 32 }
   0x7   :  { %p3017_p0 = scmp.ne.s32.totalorder %s54_s30, %s3016_s17  ;;  %p3021_p1 = scmp.lt.s32.totalorder %s54_s30, %s54_s30 }
   0x8   :  { %p3022_p2 = scmp.lt.s32.totalorder %s3020_s18, %s3016_s17 }
   0xa   :  { %p3023_p3 = por %p3022_p2, %p3021_p1 }
   0xc   :  { %p3024_p4 = pnand %p3023_p3, %p3017_p0 }
   0xe   :  { %3027 = shalt.err (!%p3024_p4)
}
   0xf   :  { %56 = dma.hbm_to_vmem [thread:$0]  %s3754_s7, 16, %s54_s30, [#allocation8]  }
  0x10   :  { %s3036_s21 = scalar_lea.vmem %s40_s16, 16  ;;  %s3040_s22 = scalar_lea.vmem %s40_s16, 32 }
  0x11   :  { %p3037_p5 = scmp.ne.s32.totalorder %s40_s16, %s3036_s21  ;;  %p3041_p6 = scmp.lt.s32.totalorder %s40_s16, %s40_s16 }
  0x12   :  { %p3042_p7 = scmp.lt.s32.totalorder %s3040_s22, %s3036_s21 }
  0x14   :  { %p3043_p8 = por %p3042_p7, %p3041_p6 }
  0x16   :  { %p3044_p9 = pnand %p3043_p8, %p3037_p5 }
  0x18   :  { %3047 = shalt.err (!%p3044_p9)
}
  0x19   :  { %42 = dma.hbm_to_vmem [thread:$0]  %s3751_s4, 16, %s40_s16, [#allocation5]  }
  0x1a   :  { %s3160_s25 = smov [#allocation9]  }
  0x1b   :  { %s62_s26 = sshll.u32 %s3160_s25, 4  ;;  %s63_s26 = int_to_ptr.vmem [resolvable:$true] %s62_s26 }
  0x1c   :  { %s3056_s27 = scalar_lea.vmem %s63_s26, 512  ;;  %p3061_p11 = scmp.lt.s32.totalorder %s63_s26, %s63_s26 }
  0x1d   :  { %p3057_p10 = scmp.ne.s32.totalorder %s63_s26, %s3056_s27  ;;  %p3062_p12 = scmp.lt.s32.totalorder %s3056_s27, %s3056_s27 }
  0x1f   :  { %p3063_p13 = por %p3062_p12, %p3061_p11 }
  0x21   :  { %p3064_p0 = pnand %p3063_p13, %p3057_p10 }
  0x23   :  { %3067 = shalt.err (!%p3064_p0)
}
  0x24   :  { %s3161_s7 = smov 128   ;;  %s3162_s28 = smov 8  }
  0x25   :  { %68 = dma.hbm_to_vmem [thread:$0]  %s3755_s8, 512, %s63_s26, [#allocation8], %s3161_s7, %s3161_s7, %s3162_s28  }
  0x26   :  { %s3163_s4 = smov [#allocation10]  }
  0x27   :  { %s75_s15 = sshll.u32 %s3163_s4, 4  ;;  %s76_s15 = int_to_ptr.vmem [resolvable:$true] %s75_s15 }
  0x28   :  { %s3076_s16 = scalar_lea.vmem %s76_s15, 16  ;;  %s3080_s17 = scalar_lea.vmem %s76_s15, 32 }
  0x29   :  { %p3077_p1 = scmp.ne.s32.totalorder %s76_s15, %s3076_s16  ;;  %p3081_p2 = scmp.lt.s32.totalorder %s76_s15, %s76_s15 }
  0x2a   :  { %p3082_p3 = scmp.lt.s32.totalorder %s3080_s17, %s3076_s16 }
  0x2c   :  { %p3083_p4 = por %p3082_p3, %p3081_p2 }
  0x2e   :  { %p3084_p5 = pnand %p3083_p4, %p3077_p1 }
  0x30   :  { %3087 = shalt.err (!%p3084_p5)
}
  0x31   :  { %78 = dma.hbm_to_vmem [thread:$0]  %s3756_s9, 16, %s76_s15, [#allocation11]  }
  0x32   :  { %3148 = dma.done.wait [#allocation5], 16  }
  0x33   :  { %3149 = vsyncadd [#allocation5], 4294967280 }
  0x34   :  { %3150 = dma.done.wait [#allocation8], 528  }
  0x35   :  { %3151 = vsyncadd [#allocation8], 4294966768 }
  0x36   :  { %3152 = dma.done.wait [#allocation11], 16  }
  0x37   :  { %3153 = vsyncadd [#allocation11], 4294967280  ;;  %v3164_v0 = vmov 0   ;;  %v97_v1 = vld [vmem:[%s3747_s0 + $0x10] sm:$0xff]  ;;  %v95_v2 = vld [vmem:[%s3747_s0] sm:$0xff]  ;;  %v3165_v20 = vmov 0.0   ;;  %v103_v21 = vlaneseq }
  0x38   :  { %2879 = vset.pattern.permute.xlu1 %v3164_v0  ;;  %2878 = vset.pattern.permute.xlu0 %v3164_v0  ;;  %v98_v3 = vld [vmem:[%s3747_s0 + $0x18] sm:$0xff]  ;;  %v96_v4 = vld [vmem:[%s3747_s0 + $0x8] sm:$0xff]  ;;  %v159_v6 = vld [vmem:[%s3748_s1 + $0x30] sm:$0xff]  ;;  %vm161_vm0 = vcmask 523264   ;;  %vm3166_vm9 = vmmov 0   ;;  %s3167_s30 = smov 32  }
  0x39   :  { %112 = vperm.xlu1 %2879, %v97_v1   ;;  %106 = vperm.xlu0 %2878, %v95_v2   ;;  %v160_v5 = vld [vmem:[%s3748_s1 + $0x38] sm:$0xff]  ;;  %v158_v7 = vld [vmem:[%s3748_s1 + $0x28] sm:$0xff]  ;;  %v99_v9 = vld [vmem:[%s3747_s0 + $0x20] sm:$0xff]  ;;  %v104_v22 = vand.u32 127, %v103_v21  ;;  %vm302_vm10 = vcmask 261120   ;;  %s3168_s4 = smov 64  }
  0x3a   :  { %2608 = vmatprep.subr.mxu0 %v160_v5  ;;  %v100_v8 = vld [vmem:[%s3747_s0 + $0x28] sm:$0xff]  ;;  %v157_v10 = vld [vmem:[%s3748_s1 + $0x20] sm:$0xff]  ;;  %v102_v11 = vld [vmem:[%s3747_s0 + $0x38] sm:$0xff]  ;;  %s3170_s29 = smov [#allocation13]  }
  0x3b   :  { %2609 = vmatpush3.msra.mxu0 %v160_v5  ;;  %v101_v12 = vld [vmem:[%s3747_s0 + $0x30] sm:$0xff]  ;;  %v156_v13 = vld [vmem:[%s3748_s1 + $0x18] sm:$0xff]  ;;  %v154_v15 = vld [vmem:[%s3748_s1 + $0x8] sm:$0xff] }
  0x3c   :  { %2610 = vmatprep.subr.mxu0 %v159_v6  ;;  %v155_v14 = vld [vmem:[%s3748_s1 + $0x10] sm:$0xff]  ;;  %v294_v16 = vld [vmem:[%s3749_s2 + $0x18] sm:$0xff]  ;;  %v153_v18 = vld [vmem:[%s3748_s1] sm:$0xff] }
  0x3d   :  { %115 = vperm.xlu1 %2879, %v98_v3   ;;  %109 = vperm.xlu0 %2878, %v96_v4   ;;  %v293_v17 = vld [vmem:[%s3749_s2 + $0x10] sm:$0xff]  ;;  %v292_v19 = vld [vmem:[%s3749_s2 + $0x8] sm:$0xff]  ;;  %v291_v39 = vld [vmem:[%s3749_s2] sm:$0xff] }
  0x3e   :  { %2611 = vmatpush3.msra.mxu0 %v159_v6  ;;  %2636 = vmatprep.subr.mxu1 %v294_v16  ;;  %v3344_v40 = vld [vmem:[%s3750_s3 + $0x18] sm:$0xff]  ;;  %v3351_v41 = vld [vmem:[%s3750_s3 + $0x10] sm:$0xff]  ;;  %v3358_v42 = vld [vmem:[%s3750_s3 + $0x8] sm:$0xff] }
  0x3f   :  { %2612 = vmatprep.subr.mxu0 %v158_v7  ;;  %2637 = vmatpush3.msra.mxu1 %v294_v16  ;;  %v3365_v43 = vld [vmem:[%s3750_s3] sm:$0xff] }
  0x40   :  { %2613 = vmatpush3.msra.mxu0 %v158_v7  ;;  %2638 = vmatprep.subr.mxu1 %v293_v17  ;;  %v441_v44 = vld [vmem:[%s3758_s11] sm:$0xff] }
  0x41   :  { %121 = vperm.xlu1 %2879, %v100_v8   ;;  %118 = vperm.xlu0 %2878, %v99_v9   ;;  %v440_v53 = vld [vmem:[%s3757_s10] sm:$0xff] }
  0x42   :  { %2614 = vmatprep.subr.mxu0 %v157_v10  ;;  %2639 = vmatpush3.msra.mxu1 %v293_v17  ;;  %v2429_v54 = vld [vmem:[#allocation4] ss:$0 sm:$0xff] }
  0x43   :  { %2615 = vmatpush3.msra.mxu0 %v157_v10  ;;  %2640 = vmatprep.subr.mxu1 %v292_v19 }
  0x44   :  { %2616 = vmatprep.subr.mxu0 %v156_v13  ;;  %2641 = vmatpush3.msra.mxu1 %v292_v19 }
  0x45   :  { %127 = vperm.xlu1 %2879, %v102_v11   ;;  %124 = vperm.xlu0 %2878, %v101_v12  }
  0x46   :  { %2617 = vmatpush3.msra.mxu0 %v156_v13  ;;  %2642 = vmatprep.subr.mxu1 %v291_v39 }
  0x47   :  { %2618 = vmatprep.subr.mxu0 %v155_v14  ;;  %2643 = vmatpush3.msra.mxu1 %v291_v39 }
  0x48   :  { %2619 = vmatpush3.msra.mxu0 %v155_v14  ;;  %2656 = vmatprep.subr.mxu1 %v3165_v20 }
  0x49   :  { %2620 = vmatprep.subr.mxu0 %v154_v15  ;;  %529 = vrot.lane.b32.xlu1 %v441_v44, %s3167_s30 }
  0x4a   :  { %2621 = vmatpush3.msra.mxu0 %v154_v15 }
  0x4b   :  { %2622 = vmatprep.subr.mxu0 %v153_v18 }
  0x4c   :  { %2623 = vmatpush3.msra.mxu0 %v153_v18 }
  0x4d   :  { %2667 = vmatprep.subr.mxu0 %v3165_v20 }
  0xb4   :  { %v113_v23 = vpop.permute.xlu1 %112  ;;  %v107_v24 = vpop.permute.xlu0 %106 }
  0xb5   :  { %vm129_vm1 = vcmp.eq.s32.totalorder %v107_v24, %v104_v22  ;;  %vm131_vm2 = vcmp.eq.s32.totalorder %v113_v23, %v104_v22 }
  0xb6   :  { %v2413_v25 = vsel %vm129_vm1, 1.0, %v3165_v20  ;;  %v2415_v28 = vsel %vm131_vm2, 1.0, %v3165_v20 }
  0xb7   :  { %2624 = vmatprep.mubr.msk.f32.mxu0 %vm161_vm0, %v2413_v25 }
  0xb8   :  { %v116_v26 = vpop.permute.xlu1 %115  ;;  %v110_v27 = vpop.permute.xlu0 %109 }
  0xb9   :  { %vm130_vm3 = vcmp.eq.s32.totalorder %v110_v27, %v104_v22  ;;  %vm132_vm4 = vcmp.eq.s32.totalorder %v116_v26, %v104_v22 }
  0xba   :  { %v2414_v29 = vsel %vm130_vm3, 1.0, %v3165_v20  ;;  %v2416_v32 = vsel %vm132_vm4, 1.0, %v3165_v20 }
  0xbb   :  { %2625 = vmatmul.mubr.msk.f32.vlgmr.msra.gmra.mxu0 %vm161_vm0, %v2414_v29 }
  0xbc   :  { %v122_v30 = vpop.permute.xlu1 %121  ;;  %2627 = vmatprep.mubr.msk.f32.mxu0 %vm161_vm0, %v2415_v28  ;;  %v119_v31 = vpop.permute.xlu0 %118  ;;  %2668 = vmatpush3.msra.mxu0 %v3344_v40 }
  0xbd   :  { %vm133_vm5 = vcmp.eq.s32.totalorder %v119_v31, %v104_v22  ;;  %vm134_vm6 = vcmp.eq.s32.totalorder %v122_v30, %v104_v22  ;;  %2669 = vmatprep.subr.mxu0 %v3165_v20 }
  0xbe   :  { %v2417_v33 = vsel %vm133_vm5, 1.0, %v3165_v20  ;;  %v2418_v36 = vsel %vm134_vm6, 1.0, %v3165_v20  ;;  %2670 = vmatpush3.msra.mxu0 %v3351_v41 }
  0xbf   :  { %2628 = vmatmul.mubr.msk.f32.gmra.mxu0 %vm161_vm0, %v2416_v32  ;;  %2671 = vmatprep.subr.mxu0 %v3165_v20 }
  0xc0   :  { %v128_v34 = vpop.permute.xlu1 %127  ;;  %2630 = vmatprep.mubr.msk.f32.mxu0 %vm161_vm0, %v2417_v33  ;;  %v125_v35 = vpop.permute.xlu0 %124  ;;  %2672 = vmatpush3.msra.mxu0 %v3358_v42 }
  0xc1   :  { %vm135_vm7 = vcmp.eq.s32.totalorder %v125_v35, %v104_v22  ;;  %vm136_vm8 = vcmp.eq.s32.totalorder %v128_v34, %v104_v22  ;;  %2673 = vmatprep.subr.mxu0 %v3165_v20 }
  0xc2   :  { %v2419_v37 = vsel %vm135_vm7, 1.0, %v3165_v20  ;;  %v2420_v38 = vsel %vm136_vm8, 1.0, %v3165_v20  ;;  %2674 = vmatpush3.msra.mxu0 %v3365_v43 }
  0xc3   :  { %2631 = vmatmul.mubr.msk.f32.gmra.mxu0 %vm161_vm0, %v2418_v36  ;;  %2689 = vmatprep.subr.mxu0 %v3165_v20 }
  0xc4   :  { %2633 = vmatprep.mubr.msk.f32.mxu0 %vm161_vm0, %v2419_v37  ;;  %v530_v17 = vpop.permute.xlu1 %529 }
  0xc7   :  { %2634 = vmatmul.mubr.msk.f32.gmra.mxu0 %vm161_vm0, %v2420_v38 }
  0xc8   :  { %2675 = vmatprep.mubr.msk.f32.mxu0 %vm3166_vm9, %v3165_v20 }
 0x17b   :  { %v2626_v45 = vpop.f32.mrf.mxu0 }
 0x17d   :  { %v252_v46 = vpop.f32.mrf.mxu0 }
 0x17e   :  { %2644 = vmatprep.mubr.msk.f32.mxu1 %vm302_vm10, %v252_v46 }
 0x17f   :  { %v2629_v47 = vpop.f32.mrf.mxu0  ;;  %2645 = vmatmul.mubr.msk.f32.vlgmr.msra.gmra.mxu1 %vm302_vm10, %v2626_v45 }
 0x180   :  { %2657 = vmatpush3.msra.mxu1 %v3344_v40 }
 0x181   :  { %v262_v48 = vpop.f32.mrf.mxu0  ;;  %2658 = vmatprep.subr.mxu1 %v3165_v20 }
 0x182   :  { %2647 = vmatprep.mubr.msk.f32.mxu1 %vm302_vm10, %v262_v48  ;;  %2659 = vmatpush3.msra.mxu1 %v3351_v41 }
 0x183   :  { %v2632_v49 = vpop.f32.mrf.mxu0  ;;  %2648 = vmatmul.mubr.msk.f32.gmra.mxu1 %vm302_vm10, %v2629_v47  ;;  %2660 = vmatprep.subr.mxu1 %v3165_v20 }
 0x184   :  { %2661 = vmatpush3.msra.mxu1 %v3358_v42 }
 0x185   :  { %v272_v50 = vpop.f32.mrf.mxu0  ;;  %2662 = vmatprep.subr.mxu1 %v3165_v20 }
 0x186   :  { %2650 = vmatprep.mubr.msk.f32.mxu1 %vm302_vm10, %v272_v50  ;;  %2663 = vmatpush3.msra.mxu1 %v3365_v43 }
 0x187   :  { %v2635_v51 = vpop.f32.mrf.mxu0  ;;  %2651 = vmatmul.mubr.msk.f32.gmra.mxu1 %vm302_vm10, %v2632_v49  ;;  %2678 = vmatprep.subr.mxu1 %v3165_v20 }
 0x189   :  { %v282_v52 = vpop.f32.mrf.mxu0 }
 0x18a   :  { %2653 = vmatprep.mubr.msk.f32.mxu1 %vm302_vm10, %v282_v52 }
 0x18b   :  { %2654 = vmatmul.mubr.msk.f32.gmra.mxu1 %vm302_vm10, %v2635_v51 }
 0x18c   :  { %2664 = vmatprep.mubr.msk.f32.mxu1 %vm3166_vm9, %v3165_v20 }
 0x18f   :  { %2665 = vmatmul.mubr.msk.f32.vlgmr.msra.gmra.mxu1 %vm302_vm10, %v440_v53 }
 0x190   :  { %2679 = vmatpush3.msra.mxu1 %v3344_v40  ;;  %2686 = vmatprep.mubr.msk.f32.mxu1 %vm3166_vm9, %v3165_v20 }
 0x191   :  { %2680 = vmatprep.subr.mxu1 %v3165_v20 }
 0x192   :  { %2681 = vmatpush3.msra.mxu1 %v3351_v41 }
 0x193   :  { %2682 = vmatprep.subr.mxu1 %v3165_v20 }
 0x194   :  { %2683 = vmatpush3.msra.mxu1 %v3358_v42 }
 0x195   :  { %2684 = vmatprep.subr.mxu1 %v3165_v20 }
 0x196   :  { %2685 = vmatpush3.msra.mxu1 %v3365_v43 }
 0x197   :  { %2700 = vmatprep.subr.mxu1 %v3165_v20 }
 0x23f   :  { %v2646_v55 = vpop.f32.mrf.mxu1 }
 0x240   :  { %v399_v56 = vadd.f32 %v2646_v55, %v2429_v54 }
 0x241   :  { %v393_v57 = vpop.f32.mrf.mxu1 }
 0x242   :  { %v394_v5 = vadd.f32 %v2429_v54, %v393_v57 }
 0x243   :  { %v2649_v58 = vpop.f32.mrf.mxu1 }
 0x244   :  { %v3407_v59 = vadd.f32 %v2649_v58, %v2429_v54 }
 0x245   :  { %v403_v60 = vpop.f32.mrf.mxu1 }
 0x246   :  { %v3409_v61 = vadd.f32 %v2429_v54, %v403_v60 }
 0x247   :  { %v2652_v62 = vpop.f32.mrf.mxu1 }
 0x248   :  { %v3411_v63 = vadd.f32 %v2652_v62, %v2429_v54 }
 0x249   :  { %v413_v0 = vpop.f32.mrf.mxu1 }
 0x24a   :  { %v3413_v1 = vadd.f32 %v2429_v54, %v413_v0 }
 0x24b   :  { %v2655_v2 = vpop.f32.mrf.mxu1 }
 0x24c   :  { %v3415_v3 = vadd.f32 %v2655_v2, %v2429_v54 }
 0x24d   :  { %v423_v4 = vpop.f32.mrf.mxu1 }
 0x24e   :  { %v3417_v6 = vadd.f32 %v2429_v54, %v423_v4 }
 0x24f   :  { %v516_v7 = vpop.f32.mrf.mxu1 }
 0x250   :  { %v520_v8 = vadd.f32 %v516_v7, %v394_v5 }
 0x251   :  { %v2666_v9 = vpop.f32.mrf.mxu1 }
 0x252   :  { %2880 = vtanh.f32 %v520_v8  ;;  %v2439_v11 = vmul.f32 -1.442695, %v520_v8 }
 0x254   :  { %2882 = vpow2.f32 %v2439_v11 }
 0x25f   :  { %v2881_v10 = vpop.eup %2880 }
 0x260   :  { %534 = vrot.lane.b32.xlu0 %v2881_v10, %s3167_s30 }
 0x261   :  { %v2883_v12 = vpop.eup %2882 }
 0x262   :  { %v524_v13 = vadd.f32 1.0, %v2883_v12 }
 0x264   :  { %2884 = vrcp.f32 %v524_v13 }
 0x271   :  { %v2885_v14 = vpop.eup %2884 }
 0x272   :  { %v532_v18 = vmul.f32 %v2885_v14, %v530_v17 }
 0x2d2   :  { %v535_v15 = vpop.permute.xlu0 %534 }
 0x2d3   :  { %v537_v16 = vmul.f32 %v2885_v14, %v535_v15 }
 0x2d5   :  { %539 = vrot.lane.b32.xlu0 %v537_v16, %s3167_s30 }
 0x347   :  { %v540_v19 = vpop.permute.xlu0 %539 }
 0x348   :  { %v542_v21 = vadd.f32 %v540_v19, %v532_v18 }
 0x34a   :  { %2886 = vtanh.f32 %v542_v21 }
 0x357   :  { %v2887_v22 = vpop.eup %2886 }
 0x358   :  { %545 = vrot.lane.b32.xlu1 %v2887_v22, %s3167_s30 }
 0x3ca   :  { %v546_v23 = vpop.permute.xlu1 %545 }
 0x3cb   :  { %v548_v24 = vmul.f32 %v2885_v14, %v546_v23 }
 0x3cd   :  { %550 = vrot.lane.b32.xlu0 %v548_v24, %s3168_s4 }
 0x43f   :  { %v551_v25 = vpop.permute.xlu0 %550 }
 0x440   :  { %553 = vst.msk [vmem:[#allocation3] sm:$0xff] %vm302_vm10, %v551_v25  ;;  %2676 = vmatmul.mubr.msk.f32.vlgmr.msra.gmra.mxu0 %vm302_vm10, %v551_v25 }
 0x441   :  { %2690 = vmatpush3.msra.mxu0 %v3344_v40  ;;  %2697 = vmatprep.mubr.msk.f32.mxu0 %vm3166_vm9, %v3165_v20 }
 0x442   :  { %2691 = vmatprep.subr.mxu0 %v3165_v20 }
 0x443   :  { %2692 = vmatpush3.msra.mxu0 %v3351_v41 }
 0x444   :  { %2693 = vmatprep.subr.mxu0 %v3165_v20 }
 0x445   :  { %2694 = vmatpush3.msra.mxu0 %v3358_v42 }
 0x446   :  { %2695 = vmatprep.subr.mxu0 %v3165_v20 }
 0x447   :  { %2696 = vmatpush3.msra.mxu0 %v3365_v43 }
 0x448   :  { %2711 = vmatprep.subr.mxu0 %v3165_v20 }
 0x500   :  { %v624_v26 = vpop.f32.mrf.mxu0 }
 0x501   :  { %v628_v27 = vadd.f32 %v624_v26, %v399_v56 }
 0x502   :  { %v2677_v28 = vpop.f32.mrf.mxu0 }
 0x503   :  { %2888 = vtanh.f32 %v628_v27  ;;  %v2441_v30 = vmul.f32 -1.442695, %v628_v27 }
 0x505   :  { %2890 = vpow2.f32 %v2441_v30 }
 0x510   :  { %v2889_v29 = vpop.eup %2888 }
 0x511   :  { %638 = vrot.lane.b32.xlu1 %v2889_v29, %s3167_s30 }
 0x512   :  { %v2891_v31 = vpop.eup %2890 }
 0x513   :  { %v632_v32 = vadd.f32 1.0, %v2891_v31 }
 0x515   :  { %2892 = vrcp.f32 %v632_v32 }
 0x522   :  { %v2893_v33 = vpop.eup %2892 }
 0x523   :  { %v636_v36 = vmul.f32 %v2893_v33, %v542_v21 }
 0x583   :  { %v639_v34 = vpop.permute.xlu1 %638 }
 0x584   :  { %v641_v35 = vmul.f32 %v2893_v33, %v639_v34 }
 0x586   :  { %643 = vrot.lane.b32.xlu0 %v641_v35, %s3167_s30 }
 0x5f8   :  { %v644_v37 = vpop.permute.xlu0 %643 }
 0x5f9   :  { %v646_v38 = vadd.f32 %v644_v37, %v636_v36 }
 0x5fb   :  { %2894 = vtanh.f32 %v646_v38 }
 0x608   :  { %v2895_v39 = vpop.eup %2894 }
 0x609   :  { %649 = vrot.lane.b32.xlu1 %v2895_v39, %s3167_s30 }
 0x67b   :  { %v650_v44 = vpop.permute.xlu1 %649 }
 0x67c   :  { %v652_v45 = vmul.f32 %v2893_v33, %v650_v44 }
 0x67e   :  { %654 = vrot.lane.b32.xlu0 %v652_v45, %s3168_s4 }
 0x6f0   :  { %v655_v46 = vpop.permute.xlu0 %654 }
 0x6f1   :  { %658 = vst.msk [vmem:[#allocation3 + $0x8] sm:$0xff] %vm302_vm10, %v655_v46  ;;  %2687 = vmatmul.mubr.msk.f32.vlgmr.msra.gmra.mxu1 %vm302_vm10, %v655_v46 }
 0x6f2   :  { %2701 = vmatpush3.msra.mxu1 %v3344_v40  ;;  %2708 = vmatprep.mubr.msk.f32.mxu1 %vm3166_vm9, %v3165_v20 }
 0x6f3   :  { %2702 = vmatprep.subr.mxu1 %v3165_v20 }
 0x6f4   :  { %2703 = vmatpush3.msra.mxu1 %v3351_v41 }
 0x6f5   :  { %2704 = vmatprep.subr.mxu1 %v3165_v20 }
 0x6f6   :  { %2705 = vmatpush3.msra.mxu1 %v3358_v42 }
 0x6f7   :  { %2706 = vmatprep.subr.mxu1 %v3165_v20 }
 0x6f8   :  { %2707 = vmatpush3.msra.mxu1 %v3365_v43 }
 0x6f9   :  { %2722 = vmatprep.subr.mxu1 %v3165_v20 }
 0x7b1   :  { %v729_v47 = vpop.f32.mrf.mxu1 }
 0x7b2   :  { %v733_v48 = vadd.f32 %v729_v47, %v3409_v61 }
 0x7b3   :  { %v2688_v49 = vpop.f32.mrf.mxu1 }
 0x7b4   :  { %2896 = vtanh.f32 %v733_v48  ;;  %v2443_v51 = vmul.f32 -1.442695, %v733_v48 }
 0x7b6   :  { %2898 = vpow2.f32 %v2443_v51 }
 0x7c1   :  { %v2897_v50 = vpop.eup %2896 }
 0x7c2   :  { %743 = vrot.lane.b32.xlu1 %v2897_v50, %s3167_s30 }
 0x7c3   :  { %v2899_v52 = vpop.eup %2898 }
 0x7c4   :  { %v737_v53 = vadd.f32 1.0, %v2899_v52 }
 0x7c6   :  { %2900 = vrcp.f32 %v737_v53 }
 0x7d3   :  { %v2901_v54 = vpop.eup %2900 }
 0x7d4   :  { %v741_v57 = vmul.f32 %v2901_v54, %v646_v38 }
 0x834   :  { %v744_v55 = vpop.permute.xlu1 %743 }
 0x835   :  { %v746_v56 = vmul.f32 %v2901_v54, %v744_v55  ;;  %v1305_v55 = vld [vmem:[%s3752_s5 + $0x10] sm:$0xff] }
 0x837   :  { %748 = vrot.lane.b32.xlu0 %v746_v56, %s3167_s30  ;;  %v1295_v56 = vld [vmem:[#allocation3] sm:$0xff] }
 0x8a9   :  { %v749_v58 = vpop.permute.xlu0 %748 }
 0x8aa   :  { %v751_v60 = vadd.f32 %v749_v58, %v741_v57  ;;  %v1304_v57 = vld [vmem:[%s3752_s5 + $0x8] sm:$0xff]  ;;  %v1303_v58 = vld [vmem:[%s3752_s5] sm:$0xff] }
 0x8ac   :  { %2902 = vtanh.f32 %v751_v60 }
 0x8b9   :  { %v2903_v61 = vpop.eup %2902 }
 0x8ba   :  { %754 = vrot.lane.b32.xlu1 %v2903_v61, %s3167_s30 }
 0x92c   :  { %v755_v62 = vpop.permute.xlu1 %754 }
 0x92d   :  { %v757_v0 = vmul.f32 %v2901_v54, %v755_v62 }
 0x92f   :  { %759 = vrot.lane.b32.xlu0 %v757_v0, %s3168_s4 }
 0x9a1   :  { %v760_v2 = vpop.permute.xlu0 %759 }
 0x9a2   :  { %763 = vst.msk [vmem:[#allocation3 + $0x10] sm:$0xff] %vm302_vm10, %v760_v2  ;;  %2698 = vmatmul.mubr.msk.f32.vlgmr.msra.gmra.mxu0 %vm302_vm10, %v760_v2 }
 0x9a3   :  { %2712 = vmatpush3.msra.mxu0 %v3344_v40  ;;  %2719 = vmatprep.mubr.msk.f32.mxu0 %vm3166_vm9, %v3165_v20 }
 0x9a4   :  { %2713 = vmatprep.subr.mxu0 %v3165_v20 }
 0x9a5   :  { %2714 = vmatpush3.msra.mxu0 %v3351_v41 }
 0x9a6   :  { %2715 = vmatprep.subr.mxu0 %v3165_v20 }
 0x9a7   :  { %2716 = vmatpush3.msra.mxu0 %v3358_v42 }
 0x9a8   :  { %2717 = vmatprep.subr.mxu0 %v3165_v20 }
 0x9a9   :  { %2718 = vmatpush3.msra.mxu0 %v3365_v43  ;;  %v1297_v61 = vld [vmem:[#allocation3 + $0x10] sm:$0xff] }
 0x9aa   :  { %2733 = vmatprep.subr.mxu0 %v3165_v20 }
 0xa62   :  { %v834_v4 = vpop.f32.mrf.mxu0 }
 0xa63   :  { %v838_v5 = vadd.f32 %v834_v4, %v3407_v59 }
 0xa64   :  { %v2699_v7 = vpop.f32.mrf.mxu0 }
 0xa65   :  { %2904 = vtanh.f32 %v838_v5  ;;  %v2445_v9 = vmul.f32 -1.442695, %v838_v5 }
 0xa67   :  { %2906 = vpow2.f32 %v2445_v9 }
 0xa72   :  { %v2905_v8 = vpop.eup %2904 }
 0xa73   :  { %848 = vrot.lane.b32.xlu1 %v2905_v8, %s3167_s30 }
 0xa74   :  { %v2907_v10 = vpop.eup %2906 }
 0xa75   :  { %v842_v11 = vadd.f32 1.0, %v2907_v10 }
 0xa77   :  { %2908 = vrcp.f32 %v842_v11 }
 0xa84   :  { %v2909_v12 = vpop.eup %2908 }
 0xa85   :  { %v846_v15 = vmul.f32 %v2909_v12, %v751_v60  ;;  %v1296_v60 = vld [vmem:[#allocation3 + $0x8] sm:$0xff] }
 0xae5   :  { %v849_v13 = vpop.permute.xlu1 %848 }
 0xae6   :  { %v851_v14 = vmul.f32 %v2909_v12, %v849_v13 }
 0xae8   :  { %853 = vrot.lane.b32.xlu0 %v851_v14, %s3167_s30 }
 0xb5a   :  { %v854_v16 = vpop.permute.xlu0 %853 }
 0xb5b   :  { %v856_v17 = vadd.f32 %v854_v16, %v846_v15 }
 0xb5d   :  { %2910 = vtanh.f32 %v856_v17 }
 0xb6a   :  { %v2911_v59 = vpop.eup %2910 }
 0xb6b   :  { %859 = vrot.lane.b32.xlu1 %v2911_v59, %s3167_s30  ;;  %v3537_v59 = vld [vmem:[%s3753_s6 + $0x18] sm:$0xff] }
 0xbdd   :  { %v860_v18 = vpop.permute.xlu1 %859 }
 0xbde   :  { %v862_v19 = vmul.f32 %v2909_v12, %v860_v18  ;;  %v3543_v18 = vld [vmem:[%s3753_s6 + $0x10] sm:$0xff] }
 0xbe0   :  { %864 = vrot.lane.b32.xlu0 %v862_v19, %s3168_s4  ;;  %v3550_v19 = vld [vmem:[%s3753_s6 + $0x8] sm:$0xff] }
 0xc52   :  { %v865_v21 = vpop.permute.xlu0 %864 }
 0xc53   :  { %868 = vst.msk [vmem:[#allocation3 + $0x18] sm:$0xff] %vm302_vm10, %v865_v21  ;;  %2709 = vmatmul.mubr.msk.f32.vlgmr.msra.gmra.mxu1 %vm302_vm10, %v865_v21  ;;  %v3557_v21 = vld [vmem:[%s3753_s6] sm:$0xff] }
 0xc54   :  { %2723 = vmatpush3.msra.mxu1 %v3344_v40  ;;  %2730 = vmatprep.mubr.msk.f32.mxu1 %vm3166_vm9, %v3165_v20 }
 0xc55   :  { %2724 = vmatprep.subr.mxu1 %v3165_v20 }
 0xc56   :  { %2725 = vmatpush3.msra.mxu1 %v3351_v41 }
 0xc57   :  { %2726 = vmatprep.subr.mxu1 %v3165_v20 }
 0xc58   :  { %2727 = vmatpush3.msra.mxu1 %v3358_v42 }
 0xc59   :  { %2728 = vmatprep.subr.mxu1 %v3165_v20 }
 0xc5a   :  { %2729 = vmatpush3.msra.mxu1 %v3365_v43  ;;  %v1298_v62 = vld [vmem:[#allocation3 + $0x18] sm:$0xff] }
 0xd13   :  { %v939_v22 = vpop.f32.mrf.mxu1 }
 0xd14   :  { %v943_v23 = vadd.f32 %v939_v22, %v3413_v1 }
 0xd15   :  { %v2710_v24 = vpop.f32.mrf.mxu1 }
 0xd16   :  { %2912 = vtanh.f32 %v943_v23  ;;  %v2447_v26 = vmul.f32 -1.442695, %v943_v23  ;;  %v2464_v24 = vld [vmem:[%s3758_s11 + $0x8] sm:$0xff] }
 0xd18   :  { %2914 = vpow2.f32 %v2447_v26  ;;  %v2463_v26 = vld [vmem:[%s3757_s10 + $0x8] sm:$0xff]  ;;  %s3169_s10 = smov 96  }
 0xd23   :  { %v2913_v25 = vpop.eup %2912 }
 0xd24   :  { %953 = vrot.lane.b32.xlu1 %v2913_v25, %s3167_s30 }
 0xd25   :  { %v2915_v27 = vpop.eup %2914 }
 0xd26   :  { %v947_v28 = vadd.f32 1.0, %v2915_v27 }
 0xd28   :  { %2916 = vrcp.f32 %v947_v28 }
 0xd35   :  { %v2917_v29 = vpop.eup %2916 }
 0xd36   :  { %v951_v32 = vmul.f32 %v2917_v29, %v856_v17 }
 0xd96   :  { %v954_v30 = vpop.permute.xlu1 %953 }
 0xd97   :  { %v956_v31 = vmul.f32 %v2917_v29, %v954_v30 }
 0xd99   :  { %958 = vrot.lane.b32.xlu0 %v956_v31, %s3167_s30 }
 0xe0b   :  { %v959_v33 = vpop.permute.xlu0 %958 }
 0xe0c   :  { %v961_v34 = vadd.f32 %v959_v33, %v951_v32  ;;  %v3597_v33 = vld [vmem:[#allocation7] ss:$0 sm:$0xff] }
 0xe0e   :  { %2918 = vtanh.f32 %v961_v34 }
 0xe1b   :  { %v2919_v1 = vpop.eup %2918 }
 0xe1c   :  { %964 = vrot.lane.b32.xlu1 %v2919_v1, %s3167_s30 }
 0xe8e   :  { %v965_v35 = vpop.permute.xlu1 %964 }
 0xe8f   :  { %v967_v36 = vmul.f32 %v2917_v29, %v965_v35 }
 0xe91   :  { %969 = vrot.lane.b32.xlu0 %v967_v36, %s3168_s4 }
 0xf03   :  { %v970_v37 = vpop.permute.xlu0 %969 }
 0xf04   :  { %973 = vst.msk [vmem:[#allocation3 + $0x20] sm:$0xff] %vm302_vm10, %v970_v37  ;;  %2720 = vmatmul.mubr.msk.f32.vlgmr.msra.gmra.mxu0 %vm302_vm10, %v970_v37 }
 0xf05   :  { %2734 = vmatpush3.msra.mxu0 %v3344_v40  ;;  %2741 = vmatprep.mubr.msk.f32.mxu0 %vm3166_vm9, %v3165_v20 }
 0xf06   :  { %2735 = vmatprep.subr.mxu0 %v3165_v20 }
 0xf07   :  { %2736 = vmatpush3.msra.mxu0 %v3351_v41 }
 0xf08   :  { %2737 = vmatprep.subr.mxu0 %v3165_v20 }
 0xf09   :  { %2738 = vmatpush3.msra.mxu0 %v3358_v42 }
 0xf0a   :  { %2739 = vmatprep.subr.mxu0 %v3165_v20 }
 0xf0b   :  { %2740 = vmatpush3.msra.mxu0 %v3365_v43  ;;  %v1299_v0 = vld [vmem:[#allocation3 + $0x20] sm:$0xff] }
 0xf0c   :  { %2764 = vmatprep.subr.mxu0 %v3165_v20 }
 0xfc4   :  { %v1044_v38 = vpop.f32.mrf.mxu0 }
 0xfc5   :  { %v1048_v40 = vadd.f32 %v1044_v38, %v3411_v63  ;;  %v1306_v63 = vld [vmem:[%s3752_s5 + $0x18] sm:$0xff] }
 0xfc6   :  { %v2721_v39 = vpop.f32.mrf.mxu0  ;;  %2744 = vmatprep.subr.mxu1 %v1306_v63 }
 0xfc7   :  { %2920 = vtanh.f32 %v1048_v40  ;;  %v2449_v45 = vmul.f32 -1.442695, %v1048_v40 }
 0xfc9   :  { %2922 = vpow2.f32 %v2449_v45 }
 0xfd4   :  { %v2921_v44 = vpop.eup %2920 }
 0xfd5   :  { %1058 = vrot.lane.b32.xlu1 %v2921_v44, %s3167_s30 }
 0xfd6   :  { %v2923_v41 = vpop.eup %2922 }
 0xfd7   :  { %v1052_v46 = vadd.f32 1.0, %v2923_v41 }
 0xfd9   :  { %2924 = vrcp.f32 %v1052_v46 }
 0xfe6   :  { %v2925_v42 = vpop.eup %2924 }
 0xfe7   :  { %v1056_v43 = vmul.f32 %v2925_v42, %v961_v34 }
0x1047   :  { %v1059_v47 = vpop.permute.xlu1 %1058 }
0x1048   :  { %v1061_v48 = vmul.f32 %v2925_v42, %v1059_v47 }
0x104a   :  { %1063 = vrot.lane.b32.xlu0 %v1061_v48, %s3167_s30 }
0x10bc   :  { %v1064_v49 = vpop.permute.xlu0 %1063 }
0x10bd   :  { %v1066_v50 = vadd.f32 %v1064_v49, %v1056_v43 }
0x10bf   :  { %2926 = vtanh.f32 %v1066_v50 }
0x10cc   :  { %v2927_v51 = vpop.eup %2926 }
0x10cd   :  { %1069 = vrot.lane.b32.xlu1 %v2927_v51, %s3167_s30 }
0x113f   :  { %v1070_v52 = vpop.permute.xlu1 %1069 }
0x1140   :  { %v1072_v53 = vmul.f32 %v2925_v42, %v1070_v52 }
0x1142   :  { %1074 = vrot.lane.b32.xlu0 %v1072_v53, %s3168_s4 }
0x11b4   :  { %v1075_v54 = vpop.permute.xlu0 %1074 }
0x11b5   :  { %1078 = vst.msk [vmem:[#allocation3 + $0x28] sm:$0xff] %vm302_vm10, %v1075_v54  ;;  %2731 = vmatmul.mubr.msk.f32.vlgmr.msra.gmra.mxu1 %vm302_vm10, %v1075_v54 }
0x11b6   :  { %2745 = vmatpush3.msra.mxu1 %v1306_v63  ;;  %2752 = vmatprep.mubr.msk.f32.mxu1 %vm302_vm10, %v1295_v56 }
0x11b7   :  { %2746 = vmatprep.subr.mxu1 %v1305_v55 }
0x11b8   :  { %2747 = vmatpush3.msra.mxu1 %v1305_v55 }
0x11b9   :  { %2748 = vmatprep.subr.mxu1 %v1304_v57 }
0x11ba   :  { %2749 = vmatpush3.msra.mxu1 %v1304_v57 }
0x11bb   :  { %2750 = vmatprep.subr.mxu1 %v1303_v58 }
0x11bc   :  { %2751 = vmatpush3.msra.mxu1 %v1303_v58  ;;  %v1300_v2 = vld [vmem:[#allocation3 + $0x28] sm:$0xff] }
0x11bd   :  { %2753 = vmatmul.mubr.msk.f32.vlgmr.msra.gmra.mxu1 %vm302_vm10, %v1296_v60  ;;  %2786 = vmatprep.subr.mxu1 %v3165_v20 }
0x11be   :  { %2755 = vmatprep.mubr.msk.f32.mxu1 %vm302_vm10, %v1297_v61  ;;  %2787 = vmatpush3.msra.mxu1 %v3537_v59 }
0x11bf   :  { %2788 = vmatprep.subr.mxu1 %v3165_v20 }
0x11c0   :  { %2789 = vmatpush3.msra.mxu1 %v3543_v18 }
0x11c1   :  { %2756 = vmatmul.mubr.msk.f32.gmra.mxu1 %vm302_vm10, %v1298_v62  ;;  %2790 = vmatprep.subr.mxu1 %v3165_v20 }
0x11c2   :  { %2758 = vmatprep.mubr.msk.f32.mxu1 %vm302_vm10, %v1299_v0  ;;  %2791 = vmatpush3.msra.mxu1 %v3550_v19 }
0x11c3   :  { %2792 = vmatprep.subr.mxu1 %v3165_v20 }
0x11c4   :  { %2793 = vmatpush3.msra.mxu1 %v3557_v21 }
0x11c5   :  { %2759 = vmatmul.mubr.msk.f32.gmra.mxu1 %vm302_vm10, %v1300_v2  ;;  %2808 = vmatprep.subr.mxu1 %v3165_v20 }
0x1275   :  { %v1149_v4 = vpop.f32.mrf.mxu1 }
0x1276   :  { %v1153_v5 = vadd.f32 %v1149_v4, %v3417_v6 }
0x1277   :  { %v2732_v7 = vpop.f32.mrf.mxu1 }
0x1278   :  { %2928 = vtanh.f32 %v1153_v5  ;;  %v2451_v9 = vmul.f32 -1.442695, %v1153_v5 }
0x127a   :  { %2930 = vpow2.f32 %v2451_v9 }
0x127d   :  { %v3594_v28 = vpop.f32.mrf.mxu1 }
0x127e   :  { %v1410_v2 = vadd.f32 %v3594_v28, %v3597_v33 }
0x127f   :  { %v1404_v32 = vpop.f32.mrf.mxu1 }
0x1280   :  { %v1405_v34 = vadd.f32 %v3597_v33, %v1404_v32 }
0x1285   :  { %v2929_v8 = vpop.eup %2928 }
0x1286   :  { %1163 = vrot.lane.b32.xlu1 %v2929_v8, %s3167_s30 }
0x1287   :  { %v2931_v10 = vpop.eup %2930 }
0x1288   :  { %v1157_v11 = vadd.f32 1.0, %v2931_v10 }
0x128a   :  { %2932 = vrcp.f32 %v1157_v11 }
0x1297   :  { %v2933_v12 = vpop.eup %2932 }
0x1298   :  { %v1161_v15 = vmul.f32 %v2933_v12, %v1066_v50 }
0x12f8   :  { %v1164_v13 = vpop.permute.xlu1 %1163 }
0x12f9   :  { %v1166_v14 = vmul.f32 %v2933_v12, %v1164_v13 }
0x12fb   :  { %1168 = vrot.lane.b32.xlu0 %v1166_v14, %s3167_s30 }
0x136d   :  { %v1169_v16 = vpop.permute.xlu0 %1168 }
0x136e   :  { %v3530_v17 = vadd.f32 %v1169_v16, %v1161_v15 }
0x1370   :  { %2934 = vtanh.f32 %v3530_v17 }
0x137d   :  { %v2935_v6 = vpop.eup %2934 }
0x137e   :  { %1174 = vrot.lane.b32.xlu1 %v2935_v6, %s3167_s30 }
0x13f0   :  { %v1175_v22 = vpop.permute.xlu1 %1174 }
0x13f1   :  { %v1177_v23 = vmul.f32 %v2933_v12, %v1175_v22 }
0x13f3   :  { %1179 = vrot.lane.b32.xlu0 %v1177_v23, %s3168_s4 }
0x13f7   :  { %1542 = vrot.lane.b32.xlu0 %v2464_v24, %s3167_s30 }
0x1465   :  { %v1180_v25 = vpop.permute.xlu0 %1179 }
0x1466   :  { %1183 = vst.msk [vmem:[#allocation3 + $0x30] sm:$0xff] %vm302_vm10, %v1180_v25  ;;  %2742 = vmatmul.mubr.msk.f32.vlgmr.msra.gmra.mxu0 %vm302_vm10, %v1180_v25 }
0x1467   :  { %2765 = vmatpush3.msra.mxu0 %v3537_v59  ;;  %2772 = vmatprep.mubr.msk.f32.mxu0 %vm3166_vm9, %v3165_v20 }
0x1468   :  { %2766 = vmatprep.subr.mxu0 %v3165_v20 }
0x1469   :  { %2767 = vmatpush3.msra.mxu0 %v3543_v18  ;;  %v1543_v41 = vpop.permute.xlu0 %1542 }
0x146a   :  { %2768 = vmatprep.subr.mxu0 %v3165_v20 }
0x146b   :  { %2769 = vmatpush3.msra.mxu0 %v3550_v19 }
0x146c   :  { %2770 = vmatprep.subr.mxu0 %v3165_v20 }
0x146d   :  { %2771 = vmatpush3.msra.mxu0 %v3557_v21  ;;  %v1301_v27 = vld [vmem:[#allocation3 + $0x30] sm:$0xff] }
0x146e   :  { %2773 = vmatmul.mubr.msk.f32.vlgmr.msra.gmra.mxu0 %vm302_vm10, %v2463_v26  ;;  %2761 = vmatprep.mubr.msk.f32.mxu1 %vm302_vm10, %v1301_v27  ;;  %v2757_v27 = vpop.f32.mrf.mxu1 }
0x146f   :  { %2775 = vmatprep.subr.mxu0 %v3165_v20  ;;  %2783 = vmatprep.mubr.msk.f32.mxu0 %vm3166_vm9, %v3165_v20 }
0x1470   :  { %2776 = vmatpush3.msra.mxu0 %v3537_v59  ;;  %v1414_v28 = vpop.f32.mrf.mxu1 }
0x1471   :  { %2777 = vmatprep.subr.mxu0 %v3165_v20 }
0x1472   :  { %2778 = vmatpush3.msra.mxu0 %v3543_v18 }
0x1473   :  { %2779 = vmatprep.subr.mxu0 %v3165_v20 }
0x1474   :  { %2780 = vmatpush3.msra.mxu0 %v3550_v19 }
0x1475   :  { %2781 = vmatprep.subr.mxu0 %v3165_v20 }
0x1476   :  { %2782 = vmatpush3.msra.mxu0 %v3557_v21 }
0x1477   :  { %2797 = vmatprep.subr.mxu0 %v3165_v20 }
0x1526   :  { %v1254_v29 = vpop.f32.mrf.mxu0 }
0x1527   :  { %v1258_v30 = vadd.f32 %v1254_v29, %v3415_v3  ;;  %v3645_v29 = vpop.f32.mrf.mxu1 }
0x1528   :  { %v2743_v31 = vpop.f32.mrf.mxu0 }
0x1529   :  { %v2453_v49 = vmul.f32 -1.442695, %v1258_v30 }
0x152e   :  { %v1529_v1 = vpop.f32.mrf.mxu0 }
0x152f   :  { %v1533_v35 = vadd.f32 %v1529_v1, %v1405_v34  ;;  %v1415_v34 = vadd.f32 %v3597_v33, %v1414_v28 }
0x1530   :  { %v2774_v36 = vpop.f32.mrf.mxu0 }
0x1531   :  { %2936 = vtanh.f32 %v1533_v35  ;;  %v2466_v38 = vmul.f32 -1.442695, %v1533_v35 }
0x1533   :  { %2938 = vpow2.f32 %v2466_v38 }
0x153e   :  { %v2937_v37 = vpop.eup %2936 }
0x153f   :  { %1547 = vrot.lane.b32.xlu1 %v2937_v37, %s3167_s30 }
0x1540   :  { %v2939_v40 = vpop.eup %2938 }
0x1541   :  { %v1537_v39 = vadd.f32 1.0, %v2939_v40 }
0x1543   :  { %2940 = vrcp.f32 %v1537_v39 }
0x1550   :  { %v2941_v44 = vpop.eup %2940 }
0x1551   :  { %v1545_v46 = vmul.f32 %v2941_v44, %v1543_v41 }
0x15b1   :  { %v1548_v3 = vpop.permute.xlu1 %1547 }
0x15b2   :  { %v1550_v45 = vmul.f32 %v2941_v44, %v1548_v3 }
0x15b4   :  { %1552 = vrot.lane.b32.xlu1 %v1550_v45, %s3167_s30 }
0x1626   :  { %v1553_v42 = vpop.permute.xlu1 %1552 }
0x1627   :  { %v1555_v47 = vadd.f32 %v1553_v42, %v1545_v46 }
0x1629   :  { %2942 = vtanh.f32 %v1555_v47 }
0x162a   :  { %2944 = vtanh.f32 %v1258_v30  ;;  %v3647_v30 = vpop.f32.mrf.mxu1 }
0x162b   :  { %2946 = vpow2.f32 %v2453_v49 }
0x1636   :  { %v2943_v48 = vpop.eup %2942 }
0x1637   :  { %1558 = vrot.lane.b32.xlu0 %v2943_v48, %s3167_s30  ;;  %v2945_v43 = vpop.eup %2944 }
0x1638   :  { %v2947_v50 = vpop.eup %2946 }
0x1639   :  { %v1262_v63 = vadd.f32 1.0, %v2947_v50  ;;  %v1420_v50 = vadd.f32 %v2757_v27, %v3597_v33 }
0x163b   :  { %1268 = vrot.lane.b32.xlu0 %v2945_v43, %s3167_s30  ;;  %2948 = vrcp.f32 %v1262_v63 }
0x1648   :  { %v2949_v53 = vpop.eup %2948 }
0x1649   :  { %v1266_v57 = vmul.f32 %v2949_v53, %v3530_v17 }
0x16a9   :  { %v1559_v51 = vpop.permute.xlu0 %1558 }
0x16aa   :  { %v1561_v52 = vmul.f32 %v2941_v44, %v1559_v51 }
0x16ac   :  { %1564 = vrot.lane.b32.xlu1 %v1561_v52, %s3168_s4 }
0x16ad   :  { %v1269_v54 = vpop.permute.xlu0 %1268 }
0x16ae   :  { %v1271_v55 = vmul.f32 %v2949_v53, %v1269_v54 }
0x16b0   :  { %1273 = vrot.lane.b32.xlu0 %v1271_v55, %s3167_s30 }
0x171e   :  { %v1565_v56 = vpop.permute.xlu1 %1564 }
0x171f   :  { %2784 = vmatmul.mubr.msk.f32.vlgmr.msra.gmra.mxu0 %vm302_vm10, %v1565_v56 }
0x1720   :  { %2798 = vmatpush3.msra.mxu0 %v3537_v59  ;;  %2805 = vmatprep.mubr.msk.f32.mxu0 %vm3166_vm9, %v3165_v20 }
0x1721   :  { %2799 = vmatprep.subr.mxu0 %v3165_v20 }
0x1722   :  { %v1274_v58 = vpop.permute.xlu0 %1273  ;;  %2800 = vmatpush3.msra.mxu0 %v3543_v18 }
0x1723   :  { %v3613_v60 = vadd.f32 %v1274_v58, %v1266_v57  ;;  %2801 = vmatprep.subr.mxu0 %v3165_v20 }
0x1724   :  { %2802 = vmatpush3.msra.mxu0 %v3550_v19 }
0x1725   :  { %2950 = vtanh.f32 %v3613_v60  ;;  %2803 = vmatprep.subr.mxu0 %v3165_v20 }
0x1726   :  { %2804 = vmatpush3.msra.mxu0 %v3557_v21 }
0x1727   :  { %2819 = vmatprep.subr.mxu0 %v3165_v20 }
0x1732   :  { %v2951_v61 = vpop.eup %2950 }
0x1733   :  { %1279 = vrot.lane.b32.xlu0 %v2951_v61, %s3167_s30 }
0x17a5   :  { %v1280_v62 = vpop.permute.xlu0 %1279 }
0x17a6   :  { %v1282_v0 = vmul.f32 %v2949_v53, %v1280_v62 }
0x17a8   :  { %1284 = vrot.lane.b32.xlu0 %v1282_v0, %s3168_s4 }
0x17df   :  { %v1634_v4 = vpop.f32.mrf.mxu0 }
0x17e0   :  { %v1638_v5 = vadd.f32 %v1634_v4, %v1410_v2 }
0x17e1   :  { %v2785_v7 = vpop.f32.mrf.mxu0 }
0x17e2   :  { %2952 = vtanh.f32 %v1638_v5  ;;  %v2468_v11 = vmul.f32 -1.442695, %v1638_v5 }
0x17e4   :  { %2954 = vpow2.f32 %v2468_v11 }
0x17ef   :  { %v2953_v8 = vpop.eup %2952 }
0x17f0   :  { %1648 = vrot.lane.b32.xlu1 %v2953_v8, %s3167_s30 }
0x17f1   :  { %v2955_v12 = vpop.eup %2954 }
0x17f2   :  { %v1642_v13 = vadd.f32 1.0, %v2955_v12 }
0x17f4   :  { %2956 = vrcp.f32 %v1642_v13 }
0x1801   :  { %v2957_v14 = vpop.eup %2956 }
0x1802   :  { %v1646_v17 = vmul.f32 %v2957_v14, %v1555_v47 }
0x181a   :  { %v1285_v9 = vpop.permute.xlu0 %1284 }
0x181b   :  { %1288 = vst.msk [vmem:[#allocation3 + $0x38] sm:$0xff] %vm302_vm10, %v1285_v9  ;;  %1289 = vst.msk [vmem:[#allocation13] sm:$0xff] %vm302_vm10, %v1285_v9  ;;  %v1425_v9 = vadd.f32 %v3597_v33, %v3647_v30 }
0x1822   :  { %v1302_v10 = vld [vmem:[#allocation3 + $0x38] sm:$0xff] }
0x1823   :  { %2762 = vmatmul.mubr.msk.f32.gmra.mxu1 %vm302_vm10, %v1302_v10 }
0x1824   :  { %2794 = vmatprep.mubr.msk.f32.mxu1 %vm3166_vm9, %v3165_v20 }
0x1862   :  { %v1649_v15 = vpop.permute.xlu1 %1648 }
0x1863   :  { %v1651_v16 = vmul.f32 %v2957_v14, %v1649_v15 }
0x1865   :  { %1653 = vrot.lane.b32.xlu1 %v1651_v16, %s3167_s30 }
0x18d7   :  { %v1654_v6 = vpop.permute.xlu1 %1653 }
0x18d8   :  { %v1656_v22 = vadd.f32 %v1654_v6, %v1646_v17 }
0x18da   :  { %2958 = vtanh.f32 %v1656_v22 }
0x18e3   :  { %v3649_v31 = vpop.f32.mrf.mxu1 }
0x18e5   :  { %v3651_v32 = vpop.f32.mrf.mxu1 }
0x18e7   :  { %v2959_v23 = vpop.eup %2958 }
0x18e8   :  { %1659 = vrot.lane.b32.xlu1 %v2959_v23, %s3167_s30 }
0x195a   :  { %v1660_v24 = vpop.permute.xlu1 %1659 }
0x195b   :  { %v1662_v25 = vmul.f32 %v2957_v14, %v1660_v24 }
0x195d   :  { %1665 = vrot.lane.b32.xlu1 %v1662_v25, %s3168_s4 }
0x19cf   :  { %v1666_v26 = vpop.permute.xlu1 %1665 }
0x19d0   :  { %2795 = vmatmul.mubr.msk.f32.vlgmr.msra.gmra.mxu1 %vm302_vm10, %v1666_v26 }
0x19d1   :  { %2809 = vmatpush3.msra.mxu1 %v3537_v59  ;;  %2816 = vmatprep.mubr.msk.f32.mxu1 %vm3166_vm9, %v3165_v20 }
0x19d2   :  { %2810 = vmatprep.subr.mxu1 %v3165_v20 }
0x19d3   :  { %2811 = vmatpush3.msra.mxu1 %v3543_v18 }
0x19d4   :  { %2812 = vmatprep.subr.mxu1 %v3165_v20 }
0x19d5   :  { %2813 = vmatpush3.msra.mxu1 %v3550_v19 }
0x19d6   :  { %2814 = vmatprep.subr.mxu1 %v3165_v20 }
0x19d7   :  { %2815 = vmatpush3.msra.mxu1 %v3557_v21 }
0x19d8   :  { %2830 = vmatprep.subr.mxu1 %v3165_v20 }
0x1a90   :  { %v1735_v1 = vpop.f32.mrf.mxu1 }
0x1a91   :  { %v1739_v35 = vadd.f32 %v1735_v1, %v1415_v34  ;;  %v1430_v34 = vadd.f32 %v3645_v29, %v3597_v33 }
0x1a92   :  { %v2796_v36 = vpop.f32.mrf.mxu1 }
0x1a93   :  { %2960 = vtanh.f32 %v1739_v35  ;;  %v2470_v38 = vmul.f32 -1.442695, %v1739_v35 }
0x1a95   :  { %2962 = vpow2.f32 %v2470_v38 }
0x1aa0   :  { %v2961_v37 = vpop.eup %2960 }
0x1aa1   :  { %1749 = vrot.lane.b32.xlu0 %v2961_v37, %s3167_s30 }
0x1aa2   :  { %v2963_v40 = vpop.eup %2962 }
0x1aa3   :  { %v1743_v39 = vadd.f32 1.0, %v2963_v40 }
0x1aa5   :  { %2964 = vrcp.f32 %v1743_v39 }
0x1ab2   :  { %v2965_v44 = vpop.eup %2964 }
0x1ab3   :  { %v1747_v41 = vmul.f32 %v2965_v44, %v1656_v22 }
0x1b13   :  { %v1750_v3 = vpop.permute.xlu0 %1749 }
0x1b14   :  { %v1752_v45 = vmul.f32 %v2965_v44, %v1750_v3 }
0x1b16   :  { %1754 = vrot.lane.b32.xlu1 %v1752_v45, %s3167_s30 }
0x1b88   :  { %v1755_v46 = vpop.permute.xlu1 %1754 }
0x1b89   :  { %v1757_v42 = vadd.f32 %v1755_v46, %v1747_v41 }
0x1b8b   :  { %2966 = vtanh.f32 %v1757_v42 }
0x1b98   :  { %v2967_v47 = vpop.eup %2966 }
0x1b99   :  { %1760 = vrot.lane.b32.xlu0 %v2967_v47, %s3167_s30 }
0x1c0b   :  { %v1761_v48 = vpop.permute.xlu0 %1760 }
0x1c0c   :  { %v1763_v43 = vmul.f32 %v2965_v44, %v1761_v48 }
0x1c0e   :  { %1766 = vrot.lane.b32.xlu1 %v1763_v43, %s3168_s4 }
0x1c80   :  { %v1767_v49 = vpop.permute.xlu1 %1766 }
0x1c81   :  { %2806 = vmatmul.mubr.msk.f32.vlgmr.msra.gmra.mxu0 %vm302_vm10, %v1767_v49 }
0x1c82   :  { %2820 = vmatpush3.msra.mxu0 %v3537_v59  ;;  %2827 = vmatprep.mubr.msk.f32.mxu0 %vm3166_vm9, %v3165_v20 }
0x1c83   :  { %2821 = vmatprep.subr.mxu0 %v3165_v20 }
0x1c84   :  { %2822 = vmatpush3.msra.mxu0 %v3543_v18 }
0x1c85   :  { %2823 = vmatprep.subr.mxu0 %v3165_v20 }
0x1c86   :  { %2824 = vmatpush3.msra.mxu0 %v3550_v19 }
0x1c87   :  { %2825 = vmatprep.subr.mxu0 %v3165_v20 }
0x1c88   :  { %2826 = vmatpush3.msra.mxu0 %v3557_v21 }
0x1c89   :  { %2841 = vmatprep.subr.mxu0 %v3165_v20 }
0x1d41   :  { %v1836_v63 = vpop.f32.mrf.mxu0 }
0x1d42   :  { %v1840_v51 = vadd.f32 %v1836_v63, %v1420_v50 }
0x1d43   :  { %v2807_v52 = vpop.f32.mrf.mxu0 }
0x1d44   :  { %2968 = vtanh.f32 %v1840_v51  ;;  %v2472_v54 = vmul.f32 -1.442695, %v1840_v51 }
0x1d46   :  { %2970 = vpow2.f32 %v2472_v54 }
0x1d51   :  { %v2969_v53 = vpop.eup %2968 }
0x1d52   :  { %1850 = vrot.lane.b32.xlu0 %v2969_v53, %s3167_s30 }
0x1d53   :  { %v2971_v55 = vpop.eup %2970 }
0x1d54   :  { %v1844_v56 = vadd.f32 1.0, %v2971_v55 }
0x1d56   :  { %2972 = vrcp.f32 %v1844_v56 }
0x1d63   :  { %v2973_v57 = vpop.eup %2972 }
0x1d64   :  { %v1848_v62 = vmul.f32 %v2973_v57, %v1757_v42  ;;  %v1435_v42 = vadd.f32 %v3597_v33, %v3651_v32 }
0x1dc4   :  { %v1851_v58 = vpop.permute.xlu0 %1850 }
0x1dc5   :  { %v1853_v61 = vmul.f32 %v2973_v57, %v1851_v58 }
0x1dc7   :  { %1855 = vrot.lane.b32.xlu1 %v1853_v61, %s3167_s30 }
0x1e39   :  { %v1856_v0 = vpop.permute.xlu1 %1855 }
0x1e3a   :  { %v1858_v2 = vadd.f32 %v1856_v0, %v1848_v62  ;;  %v1440_v0 = vadd.f32 %v3649_v31, %v3597_v33  ;;  %v2284_v31 = vld [vmem:[#allocation9 + $0x18] sm:$0xff] }
0x1e3c   :  { %2974 = vtanh.f32 %v1858_v2 }
0x1e49   :  { %v2975_v4 = vpop.eup %2974 }
0x1e4a   :  { %1861 = vrot.lane.b32.xlu0 %v2975_v4, %s3167_s30 }
0x1ebc   :  { %v1862_v5 = vpop.permute.xlu0 %1861 }
0x1ebd   :  { %v1864_v7 = vmul.f32 %v2973_v57, %v1862_v5 }
0x1ebf   :  { %1867 = vrot.lane.b32.xlu1 %v1864_v7, %s3168_s4 }
0x1f31   :  { %v1868_v8 = vpop.permute.xlu1 %1867 }
0x1f32   :  { %2817 = vmatmul.mubr.msk.f32.vlgmr.msra.gmra.mxu1 %vm302_vm10, %v1868_v8 }
0x1f33   :  { %2831 = vmatpush3.msra.mxu1 %v3537_v59  ;;  %2838 = vmatprep.mubr.msk.f32.mxu1 %vm3166_vm9, %v3165_v20 }
0x1f34   :  { %2832 = vmatprep.subr.mxu1 %v3165_v20 }
0x1f35   :  { %2833 = vmatpush3.msra.mxu1 %v3543_v18 }
0x1f36   :  { %2834 = vmatprep.subr.mxu1 %v3165_v20 }
0x1f37   :  { %2835 = vmatpush3.msra.mxu1 %v3550_v19 }
0x1f38   :  { %2836 = vmatprep.subr.mxu1 %v3165_v20 }
0x1f39   :  { %2837 = vmatpush3.msra.mxu1 %v3557_v21 }
0x1f3a   :  { %2852 = vmatprep.subr.mxu1 %v3165_v20 }
0x1ff2   :  { %v1937_v10 = vpop.f32.mrf.mxu1 }
0x1ff3   :  { %v1941_v11 = vadd.f32 %v1937_v10, %v1425_v9 }
0x1ff4   :  { %v2818_v12 = vpop.f32.mrf.mxu1 }
0x1ff5   :  { %2976 = vtanh.f32 %v1941_v11  ;;  %v2474_v14 = vmul.f32 -1.442695, %v1941_v11 }
0x1ff7   :  { %2978 = vpow2.f32 %v2474_v14 }
0x2002   :  { %v2977_v13 = vpop.eup %2976 }
0x2003   :  { %1951 = vrot.lane.b32.xlu0 %v2977_v13, %s3167_s30 }
0x2004   :  { %v2979_v15 = vpop.eup %2978 }
0x2005   :  { %v1945_v16 = vadd.f32 1.0, %v2979_v15 }
0x2007   :  { %2980 = vrcp.f32 %v1945_v16  ;;  %v2283_v16 = vld [vmem:[#allocation9 + $0x10] sm:$0xff] }
0x2014   :  { %v2981_v17 = vpop.eup %2980 }
0x2015   :  { %v1949_v23 = vmul.f32 %v2981_v17, %v1858_v2 }
0x2075   :  { %v1952_v6 = vpop.permute.xlu0 %1951 }
0x2076   :  { %v1954_v22 = vmul.f32 %v2981_v17, %v1952_v6  ;;  %v2281_v6 = vld [vmem:[#allocation9] sm:$0xff] }
0x2078   :  { %1956 = vrot.lane.b32.xlu1 %v1954_v22, %s3167_s30 }
0x20ea   :  { %v1957_v24 = vpop.permute.xlu1 %1956 }
0x20eb   :  { %v1959_v25 = vadd.f32 %v1957_v24, %v1949_v23 }
0x20ed   :  { %2982 = vtanh.f32 %v1959_v25 }
0x20fa   :  { %v2983_v26 = vpop.eup %2982 }
0x20fb   :  { %1962 = vrot.lane.b32.xlu0 %v2983_v26, %s3167_s30 }
0x216d   :  { %v1963_v27 = vpop.permute.xlu0 %1962 }
0x216e   :  { %v1965_v28 = vmul.f32 %v2981_v17, %v1963_v27  ;;  %v2282_v17 = vld [vmem:[#allocation9 + $0x8] sm:$0xff] }
0x2170   :  { %1968 = vrot.lane.b32.xlu1 %v1965_v28, %s3168_s4 }
0x21e2   :  { %v1969_v30 = vpop.permute.xlu1 %1968 }
0x21e3   :  { %2828 = vmatmul.mubr.msk.f32.vlgmr.msra.gmra.mxu0 %vm302_vm10, %v1969_v30 }
0x21e4   :  { %2842 = vmatpush3.msra.mxu0 %v3537_v59  ;;  %2849 = vmatprep.mubr.msk.f32.mxu0 %vm3166_vm9, %v3165_v20 }
0x21e5   :  { %2843 = vmatprep.subr.mxu0 %v3165_v20 }
0x21e6   :  { %2844 = vmatpush3.msra.mxu0 %v3543_v18 }
0x21e7   :  { %2845 = vmatprep.subr.mxu0 %v3165_v20 }
0x21e8   :  { %2846 = vmatpush3.msra.mxu0 %v3550_v19 }
0x21e9   :  { %2847 = vmatprep.subr.mxu0 %v3165_v20 }
0x21ea   :  { %2848 = vmatpush3.msra.mxu0 %v3557_v21 }
0x22a3   :  { %v2038_v1 = vpop.f32.mrf.mxu0 }
0x22a4   :  { %v2042_v59 = vadd.f32 %v2038_v1, %v1430_v34 }
0x22a5   :  { %v2829_v35 = vpop.f32.mrf.mxu0 }
0x22a6   :  { %2984 = vtanh.f32 %v2042_v59  ;;  %v2476_v37 = vmul.f32 -1.442695, %v2042_v59 }
0x22a8   :  { %2986 = vpow2.f32 %v2476_v37 }
0x22b3   :  { %v2985_v36 = vpop.eup %2984 }
0x22b4   :  { %2052 = vrot.lane.b32.xlu0 %v2985_v36, %s3167_s30 }
0x22b5   :  { %v2987_v18 = vpop.eup %2986 }
0x22b6   :  { %v2046_v38 = vadd.f32 1.0, %v2987_v18 }
0x22b8   :  { %2988 = vrcp.f32 %v2046_v38 }
0x22c5   :  { %v2989_v19 = vpop.eup %2988 }
0x22c6   :  { %v2050_v21 = vmul.f32 %v2989_v19, %v1959_v25 }
0x2326   :  { %v2053_v40 = vpop.permute.xlu0 %2052 }
0x2327   :  { %v2055_v39 = vmul.f32 %v2989_v19, %v2053_v40 }
0x2329   :  { %2057 = vrot.lane.b32.xlu1 %v2055_v39, %s3167_s30 }
0x239b   :  { %v2058_v44 = vpop.permute.xlu1 %2057 }
0x239c   :  { %v2060_v29 = vadd.f32 %v2058_v44, %v2050_v21 }
0x239e   :  { %2990 = vtanh.f32 %v2060_v29 }
0x23ab   :  { %v2991_v3 = vpop.eup %2990 }
0x23ac   :  { %2063 = vrot.lane.b32.xlu0 %v2991_v3, %s3167_s30 }
0x241e   :  { %v2064_v45 = vpop.permute.xlu0 %2063 }
0x241f   :  { %v2066_v41 = vmul.f32 %v2989_v19, %v2064_v45 }
0x2421   :  { %2069 = vrot.lane.b32.xlu1 %v2066_v41, %s3168_s4 }
0x2493   :  { %v2070_v46 = vpop.permute.xlu1 %2069 }
0x2494   :  { %2839 = vmatmul.mubr.msk.f32.vlgmr.msra.gmra.mxu1 %vm302_vm10, %v2070_v46 }
0x2495   :  { %2860 = vmatprep.mubr.msk.f32.mxu1 %vm3166_vm9, %v3165_v20  ;;  %2853 = vmatpush3.msra.mxu1 %v2284_v31 }
0x2496   :  { %2854 = vmatprep.subr.mxu1 %v3165_v20 }
0x2497   :  { %2855 = vmatpush3.msra.mxu1 %v2283_v16 }
0x2498   :  { %2856 = vmatprep.subr.mxu1 %v3165_v20 }
0x2499   :  { %2857 = vmatpush3.msra.mxu1 %v2282_v17 }
0x249a   :  { %2858 = vmatprep.subr.mxu1 %v3165_v20 }
0x249b   :  { %2859 = vmatpush3.msra.mxu1 %v2281_v6 }
0x2554   :  { %v2139_v47 = vpop.f32.mrf.mxu1 }
0x2555   :  { %v2143_v48 = vadd.f32 %v2139_v47, %v1435_v42 }
0x2556   :  { %v2840_v43 = vpop.f32.mrf.mxu1 }
0x2557   :  { %2992 = vtanh.f32 %v2143_v48  ;;  %v2478_v50 = vmul.f32 -1.442695, %v2143_v48 }
0x2559   :  { %2994 = vpow2.f32 %v2478_v50 }
0x2564   :  { %v2993_v49 = vpop.eup %2992 }
0x2565   :  { %2153 = vrot.lane.b32.xlu0 %v2993_v49, %s3167_s30 }
0x2566   :  { %v2995_v63 = vpop.eup %2994 }
0x2567   :  { %v2147_v51 = vadd.f32 1.0, %v2995_v63 }
0x2569   :  { %2996 = vrcp.f32 %v2147_v51 }
0x2576   :  { %v2997_v52 = vpop.eup %2996 }
0x2577   :  { %v2151_v55 = vmul.f32 %v2997_v52, %v2060_v29 }
0x25d7   :  { %v2154_v53 = vpop.permute.xlu0 %2153 }
0x25d8   :  { %v2156_v54 = vmul.f32 %v2997_v52, %v2154_v53 }
0x25da   :  { %2158 = vrot.lane.b32.xlu1 %v2156_v54, %s3167_s30 }
0x264c   :  { %v2159_v56 = vpop.permute.xlu1 %2158 }
0x264d   :  { %v2161_v32 = vadd.f32 %v2159_v56, %v2151_v55 }
0x264f   :  { %2998 = vtanh.f32 %v2161_v32 }
0x265c   :  { %v2999_v57 = vpop.eup %2998 }
0x265d   :  { %2164 = vrot.lane.b32.xlu0 %v2999_v57, %s3167_s30 }
0x26cf   :  { %v2165_v58 = vpop.permute.xlu0 %2164 }
0x26d0   :  { %v2167_v61 = vmul.f32 %v2997_v52, %v2165_v58 }
0x26d2   :  { %2170 = vrot.lane.b32.xlu1 %v2167_v61, %s3168_s4 }
0x2744   :  { %v2171_v62 = vpop.permute.xlu1 %2170 }
0x2745   :  { %2850 = vmatmul.mubr.msk.f32.vlgmr.msra.gmra.mxu0 %vm302_vm10, %v2171_v62 }
0x2805   :  { %v2240_v2 = vpop.f32.mrf.mxu0 }
0x2806   :  { %v2244_v4 = vadd.f32 %v2240_v2, %v1440_v0 }
0x2807   :  { %v2851_v5 = vpop.f32.mrf.mxu0 }
0x2808   :  { %3000 = vtanh.f32 %v2244_v4  ;;  %v2480_v8 = vmul.f32 -1.442695, %v2244_v4 }
0x280a   :  { %3002 = vpow2.f32 %v2480_v8 }
0x2815   :  { %v3001_v7 = vpop.eup %3000 }
0x2816   :  { %2254 = vrot.lane.b32.xlu0 %v3001_v7, %s3167_s30 }
0x2817   :  { %v3003_v9 = vpop.eup %3002 }
0x2818   :  { %v2248_v10 = vadd.f32 1.0, %v3003_v9 }
0x281a   :  { %3004 = vrcp.f32 %v2248_v10 }
0x2827   :  { %v3005_v11 = vpop.eup %3004 }
0x2828   :  { %v2252_v14 = vmul.f32 %v3005_v11, %v2161_v32 }
0x2888   :  { %v2255_v12 = vpop.permute.xlu0 %2254 }
0x2889   :  { %v2257_v13 = vmul.f32 %v3005_v11, %v2255_v12 }
0x288b   :  { %2259 = vrot.lane.b32.xlu1 %v2257_v13, %s3167_s30 }
0x28fd   :  { %v2260_v15 = vpop.permute.xlu1 %2259 }
0x28fe   :  { %v2262_v33 = vadd.f32 %v2260_v15, %v2252_v14 }
0x2900   :  { %3006 = vtanh.f32 %v2262_v33 }
0x290d   :  { %v3007_v22 = vpop.eup %3006 }
0x290e   :  { %2265 = vrot.lane.b32.xlu0 %v3007_v22, %s3167_s30  ;;  %s2380_s30 = sshll.u32 %s3170_s29, 4  ;;  %s2381_s30 = int_to_ptr.vmem [resolvable:$true] %s2380_s30 }
0x290f   :  { %s3088_s3 = scalar_lea.vmem %s2381_s30, 256  ;;  %p3093_p7 = scmp.lt.s32.totalorder %s2381_s30, %s2381_s30 }
0x2910   :  { %p3089_p6 = scmp.ne.s32.totalorder %s2381_s30, %s3088_s3  ;;  %p3094_p8 = scmp.lt.s32.totalorder %s3088_s3, %s3088_s3 }
0x2912   :  { %1291 = vrot.lane.b32.xlu0 %v3613_v60, %s3169_s10  ;;  %p3095_p9 = por %p3094_p8, %p3093_p7 }
0x2914   :  { %p3096_p10 = pnand %p3095_p9, %p3089_p6 }
0x2980   :  { %v2266_v23 = vpop.permute.xlu0 %2265 }
0x2981   :  { %v2268_v24 = vmul.f32 %v3005_v11, %v2266_v23 }
0x2983   :  { %2270 = vrot.lane.b32.xlu1 %v2268_v24, %s3168_s4 }
0x2984   :  { %v1292_v25 = vpop.permute.xlu0 %1291 }
0x2985   :  { %1294 = vst.msk [vmem:[#allocation15] sm:$0xff] %vm302_vm10, %v1292_v25 }
0x2987   :  { %2276 = vrot.lane.b32.xlu1 %v2262_v33, %s3169_s10 }
0x29f5   :  { %v2271_v26 = vpop.permute.xlu1 %2270 }
0x29f6   :  { %2274 = vst.msk [vmem:[#allocation13 + $0x8] sm:$0xff] %vm302_vm10, %v2271_v26  ;;  %2861 = vmatmul.mubr.msk.f32.vlgmr.msra.gmra.mxu1 %vm302_vm10, %v2271_v26 }
0x29f9   :  { %v2277_v20 = vpop.permute.xlu1 %2276 }
0x29fa   :  { %2280 = vst.msk [vmem:[#allocation15 + $0x8] sm:$0xff] %vm302_vm10, %v2277_v20 }
0x29fb   :  { %3099 = shalt.err (!%p3096_p10)
}
0x29fc   :  { %2386 = dma.vmem_to_hbm [thread:$0]  %s2381_s30, 256, %s3760_s13, [#allocation14], %s3161_s7, %s3161_s7, %s3162_s28  }
0x29fd   :  { %s3171_s15 = smov [#allocation15]  }
0x29fe   :  { %s2392_s16 = sshll.u32 %s3171_s15, 4  ;;  %s2393_s16 = int_to_ptr.vmem [resolvable:$true] %s2392_s16 }
0x29ff   :  { %s3108_s17 = scalar_lea.vmem %s2393_s16, 256  ;;  %p3113_p12 = scmp.lt.s32.totalorder %s2393_s16, %s2393_s16 }
0x2a00   :  { %p3109_p11 = scmp.ne.s32.totalorder %s2393_s16, %s3108_s17  ;;  %p3114_p13 = scmp.lt.s32.totalorder %s3108_s17, %s3108_s17 }
0x2a02   :  { %p3115_p0 = por %p3114_p13, %p3113_p12 }
0x2a04   :  { %p3116_p1 = pnand %p3115_p0, %p3109_p11 }
0x2a06   :  { %3119 = shalt.err (!%p3116_p1)
}
0x2a07   :  { %2398 = dma.vmem_to_hbm [thread:$0]  %s2393_s16, 256, %s3761_s14, [#allocation14], %s3161_s7, %s3161_s7, %s3162_s28   ;;  %v2481_v60 = vld [vmem:[#allocation10] ss:$0 sm:$0xff] }
0x2a08   :  { %s3172_s8 = smov [#allocation12]  }
0x2a09   :  { %s2371_s13 = sshll.u32 %s3172_s8, 4  ;;  %s2372_s13 = int_to_ptr.vmem [resolvable:$true] %s2371_s13 }
0x2a0a   :  { %s3128_s1 = scalar_lea.vmem %s2372_s13, 128  ;;  %p3133_p3 = scmp.lt.s32.totalorder %s2372_s13, %s2372_s13 }
0x2a0b   :  { %p3129_p2 = scmp.ne.s32.totalorder %s2372_s13, %s3128_s1  ;;  %p3134_p4 = scmp.lt.s32.totalorder %s3128_s1, %s3128_s1 }
0x2a0d   :  { %p3135_p5 = por %p3134_p4, %p3133_p3 }
0x2a0f   :  { %p3136_p6 = pnand %p3135_p5, %p3129_p2 }
0x2ab6   :  { %v2360_v27 = vpop.f32.mrf.mxu1 }
0x2ab7   :  { %v2361_v28 = vadd.f32 %v2481_v60, %v2360_v27 }
0x2ab8   :  { %v2862_v30 = vpop.f32.mrf.mxu1 }
0x2ab9   :  { %2364 = vst.msk [vmem:[#allocation12] sm:$0xff] %vm161_vm0, %v2361_v28 }
0x2aba   :  { %3139 = shalt.err (!%p3136_p6)
}
0x2abb   :  { %2374 = dma.vmem_to_hbm [thread:$0]  %s2372_s13, 128, %s3759_s12, [#allocation6]  }
0x2abc   :  { %3154 = dma.done.wait [#allocation6], 128  }
0x2abd   :  { %3155 = vsyncadd [#allocation6], 4294967168 }
0x2abe   :  { %3156 = dma.done.wait [#allocation14], 512  }
0x2abf   :  { %3157 = vsyncadd [#allocation14], 4294966784 }
0x2ac0   :  { %2408 = vsyncpa [#allocation5], 1 }
0x2ac1   :  { %2409 = vsyncpa [#allocation8], 1 }
0x2ac2   :  { %2410 = vsyncpa [#allocation11], 1 }
0x2ac3   :  { %2411 = vsyncpa [#allocation6], 1 }
0x2ac4   :  { %2412 = vsyncpa [#allocation14], 1 }

</bundles_post_ra>
